<compile_context>
chip_gen: v6e
topology: v6e:2x2x1
jax: 0.10.0
libtpu: 0.0.40
codegen_flags: <defaults>
</compile_context>

<pallas_src>
import functools

import jax
import jax.numpy as jnp
from jax.experimental import pallas as pl
from jax.experimental.pallas import tpu as pltpu


def _round_up(x, m):
    return (x + m - 1) // m * m


def _gru_fused_kernel(x_ref, w_ih_ref, w_hh_ref, b_comb_ref, b_hhn_ref,
                      h_out_ref, gx_scratch, h_scratch,
                      *, seq_block, hidden_pad, seq_len, tail, unroll):
    """One grid step == up to `seq_block` GRU timesteps.

    x_ref     : (seq_block*Bp, Ep) f32   time-major x slab (t-major rows of Bp)
    w_ih_ref  : (Ep, 3*Hp)         f32   input weights, gate-aligned lanes
    w_hh_ref  : (Hp, 3*Hp)         f32   recurrent weights, gate-aligned lanes
    b_comb_ref: (1, 3*Hp)          f32   b_ih (all gates) + b_hh (r, z gates)
    b_hhn_ref : (1, Hp)            f32   b_hh for the n-gate only
    h_out_ref : (Bp, Hp)           f32   final hidden state (written last step)
    gx_scratch: (seq_block*Bp, 3*Hp) f32 per-block input projection
    h_scratch : (Bp, Hp)           f32   hidden state carried across grid steps
    """
    Hp = hidden_pad
    blk = pl.program_id(0)

    @pl.when(blk == 0)
    def _():
        h_scratch[...] = jnp.zeros_like(h_scratch)

    # Fused input projection for the whole block: one big MXU matmul, f32.
    gx_scratch[...] = (
        jnp.dot(x_ref[...], w_ih_ref[...], preferred_element_type=jnp.float32)
        + b_comb_ref[...])

    w_hh = w_hh_ref[...]                                          # resident
    b_hh_n = jnp.broadcast_to(b_hhn_ref[...], h_scratch.shape)    # hoisted once
    Bp = h_scratch.shape[0]

    def step(t, h):
        row = pl.multiple_of(t * Bp, 8)
        gx_t = gx_scratch[pl.ds(row, Bp), :]                      # (Bp, 3Hp)
        gh = jnp.dot(h, w_hh, preferred_element_type=jnp.float32)  # (Bp, 3Hp)
        # PyTorch gate order r, z, n; each gate owns a full 128-lane group.
        r = jax.nn.sigmoid(gx_t[:, 0:Hp] + gh[:, 0:Hp])
        z = jax.nn.sigmoid(gx_t[:, Hp:2 * Hp] + gh[:, Hp:2 * Hp])
        n = jnp.tanh(gx_t[:, 2 * Hp:3 * Hp] + r * (gh[:, 2 * Hp:3 * Hp] + b_hh_n))
        return n + z * (h - n)                                    # == (1-z)*n + z*h

    if tail:
        # Last block may be partial: dynamic trip count, no wasted timesteps.
        n_valid = jnp.minimum(seq_block, seq_len - blk * seq_block)
        h_scratch[...] = jax.lax.fori_loop(0, n_valid, step, h_scratch[...])
    else:
        h_scratch[...] = jax.lax.fori_loop(0, seq_block, step, h_scratch[...],
                                           unroll=unroll)

    @pl.when(blk == pl.num_programs(0) - 1)
    def _():
        h_out_ref[...] = h_scratch[...].astype(h_out_ref.dtype)


def gru_encoder_forward(x, w_ih, w_hh, b_ih, b_hh, *,
                        max_seq_block=None,
                        vmem_budget_bytes=24 * 1024 * 1024):
    """x: (batch, seq, emb).  Returns hidden: (1, batch, hidden)."""
    B, S, E = x.shape
    H = w_hh.shape[1]
    Hp = _round_up(H, 128)            # each gate gets its own 128-lane group(s)
    Ep = _round_up(E, 128)            # lane/contraction alignment for x @ W_ih
    Bp = _round_up(B, 8)              # sublane alignment

    # TODO(synk): nn.Dropout(0.3) is stochastic in train mode; eval-mode
    # (identity) semantics are implemented here (pltpu.prng_* would be needed
    # for training-mode masking).

    # --- gate-aligned padded weights (wrapper-side, traced once) ------------
    def pad_gate_cols(w_t, rows_to):  # (K, 3H) -> (rows_to, 3*Hp)
        K = w_t.shape[0]
        out = jnp.zeros((rows_to, 3 * Hp), jnp.float32)
        for g in range(3):
            out = out.at[:K, g * Hp:g * Hp + H].set(w_t[:, g * H:(g + 1) * H])
        return out

    w_ih_p = pad_gate_cols(w_ih.T.astype(jnp.float32), Ep)        # (Ep, 3Hp)
    w_hh_p = pad_gate_cols(w_hh.T.astype(jnp.float32), Hp)        # (Hp, 3Hp)

    # b_ih (all gates) + b_hh (r, z) folded into gx; b_hh_n applied in-kernel.
    b_ih_f = b_ih.astype(jnp.float32)
    b_hh_f = b_hh.astype(jnp.float32)
    b_comb = jnp.zeros((1, 3 * Hp), jnp.float32)
    b_comb = b_comb.at[0, 0:H].set(b_ih_f[0:H] + b_hh_f[0:H])                 # r
    b_comb = b_comb.at[0, Hp:Hp + H].set(b_ih_f[H:2 * H] + b_hh_f[H:2 * H])   # z
    b_comb = b_comb.at[0, 2 * Hp:2 * Hp + H].set(b_ih_f[2 * H:3 * H])         # n
    b_hh_n = jnp.zeros((1, Hp), jnp.float32).at[0, :H].set(b_hh_f[2 * H:3 * H])

    # --- seq_block sized from a conservative VMEM budget ---------------------
    # Double-buffered x slab + gx scratch dominate; weights assumed 2x-buffered.
    # TODO(synk): derive the budget from pltpu.get_tpu_info() per generation
    # and single-buffer the loop-invariant weight inputs (pl.Buffered(1)).
    bytes_f32 = 4
    fixed_vmem = (2 * (Ep + Hp) * 3 * Hp          # w_ih + w_hh (double-buffered)
                  + 2 * (3 * Hp + Hp)             # biases
                  + 3 * Bp * Hp) * bytes_f32      # h scratch + output buffers
    per_step_vmem = Bp * (2 * Ep + 3 * Hp) * bytes_f32
    seq_block = max(1, (vmem_budget_bytes - fixed_vmem) // per_step_vmem)
    seq_block = int(min(seq_block, S))
    if max_seq_block is not None:
        seq_block = max(1, min(seq_block, int(max_seq_block)))
    S_pad = _round_up(S, seq_block)
    tail = (S % seq_block) != 0

    # --- time-major, padded, flattened x (small copy; gx never hits HBM) ----
    x_tm = jnp.transpose(x.astype(jnp.float32), (1, 0, 2))        # (S, B, E)
    x_tm = jnp.pad(x_tm, ((0, S_pad - S), (0, Bp - B), (0, Ep - E)))
    x_2d = x_tm.reshape(S_pad * Bp, Ep)                           # (S_pad*Bp, Ep)

    kernel = functools.partial(
        _gru_fused_kernel,
        seq_block=seq_block, hidden_pad=Hp, seq_len=S, tail=tail,
        unroll=min(8, seq_block))

    h_pad = pl.pallas_call(
        kernel,
        out_shape=jax.ShapeDtypeStruct((Bp, Hp), jnp.float32),
        grid_spec=pltpu.PrefetchScalarGridSpec(
            num_scalar_prefetch=0,
            grid=(S_pad // seq_block,),
            in_specs=[
                pl.BlockSpec((seq_block * Bp, Ep), lambda i: (i, 0)),  # x slab
                pl.BlockSpec((Ep, 3 * Hp), lambda i: (0, 0)),   # W_ih^T (resident)
                pl.BlockSpec((Hp, 3 * Hp), lambda i: (0, 0)),   # W_hh^T (resident)
                pl.BlockSpec((1, 3 * Hp), lambda i: (0, 0)),    # folded bias
                pl.BlockSpec((1, Hp), lambda i: (0, 0)),        # b_hh (n gate)
            ],
            out_specs=pl.BlockSpec((Bp, Hp), lambda i: (0, 0)),  # resident output
            scratch_shapes=[
                pltpu.VMEM((seq_block * Bp, 3 * Hp), jnp.float32),  # gx block
                pltpu.VMEM((Bp, Hp), jnp.float32),                  # carried h_t
            ]),
        compiler_params=pltpu.CompilerParams(
            dimension_semantics=("arbitrary",),    # serial recurrence over time
            vmem_limit_bytes=32 * 1024 * 1024,
        ),
        # TODO(synk): for large-batch workloads on v7x, add a leading batch
        # grid axis marked "parallel" (per-core h scratch) to use both TCs.
    )(x_2d, w_ih_p, w_hh_p, b_comb, b_hh_n)

    return h_pad[:B, :H][None].astype(x.dtype)       # (1, B, H)


def _gru_reference(x, w_ih, w_hh, b_ih, b_hh):
    """Pure-JAX lax.scan reference matching torch.nn.GRU, batch-first input."""
    B, S, E = x.shape
    H = w_hh.shape[1]
    x_tm = jnp.transpose(x.astype(jnp.float32), (1, 0, 2))
    w_ih_t = w_ih.T.astype(jnp.float32)
    w_hh_t = w_hh.T.astype(jnp.float32)

    def step(h, x_t):
        gx = jnp.dot(x_t, w_ih_t, preferred_element_type=jnp.float32) + b_ih
        gh = jnp.dot(h, w_hh_t, preferred_element_type=jnp.float32) + b_hh
        gx_r, gx_z, gx_n = jnp.split(gx, 3, axis=-1)
        gh_r, gh_z, gh_n = jnp.split(gh, 3, axis=-1)
        r = jax.nn.sigmoid(gx_r + gh_r)
        z = jax.nn.sigmoid(gx_z + gh_z)
        n = jnp.tanh(gx_n + r * gh_n)
        h_new = (1.0 - z) * n + z * h
        return h_new, None

    h0 = jnp.zeros((B, H), jnp.float32)
    h_T, _ = jax.lax.scan(step, h0, x_tm)
    return h_T[None]


if __name__ == "__main__":
    emb_dim, hidden_dim = 16, 32
    batch, seq = 4, 8

    key = jax.random.PRNGKey(0)
    k_x, k_wih, k_whh, k_bih, k_bhh = jax.random.split(key, 5)

    # Deterministic parameter init (shapes match nn.GRU(emb_dim, hidden_dim)).
    scale = 1.0 / jnp.sqrt(hidden_dim)
    x = jax.random.normal(k_x, (batch, seq, emb_dim), dtype=jnp.float32)
    w_ih = jax.random.uniform(k_wih, (3 * hidden_dim, emb_dim),
                              minval=-scale, maxval=scale, dtype=jnp.float32)
    w_hh = jax.random.uniform(k_whh, (3 * hidden_dim, hidden_dim),
                              minval=-scale, maxval=scale, dtype=jnp.float32)
    b_ih = jax.random.uniform(k_bih, (3 * hidden_dim,),
                              minval=-scale, maxval=scale, dtype=jnp.float32)
    b_hh = jax.random.uniform(k_bhh, (3 * hidden_dim,),
                              minval=-scale, maxval=scale, dtype=jnp.float32)

    ref = _gru_reference(x, w_ih, w_hh, b_ih, b_hh)

    # Single-block path (seq_block == seq): static loop bound, partial unroll.
    hidden = jax.jit(gru_encoder_forward)(x, w_ih, w_hh, b_ih, b_hh)
    hidden = jax.block_until_ready(hidden)
    assert hidden.shape == (1, batch, hidden_dim), hidden.shape
    assert jnp.allclose(hidden, ref, atol=1e-2, rtol=1e-2), \
        "mismatch vs f32 reference (single block)"

    # Multi-block path with a partial tail block: dynamic loop bound.
    hidden_tail = jax.jit(
        functools.partial(gru_encoder_forward, max_seq_block=5)
    )(x, w_ih, w_hh, b_ih, b_hh)
    hidden_tail = jax.block_until_ready(hidden_tail)
    assert hidden_tail.shape == (1, batch, hidden_dim), hidden_tail.shape
    assert jnp.allclose(hidden_tail, ref, atol=1e-2, rtol=1e-2), \
        "mismatch vs f32 reference (blocked + tail)"

    print("KERNEL_OK")
</pallas_src>

<mosaic_0001>
module attributes {stable_mosaic.version = 11 : i64} {
  func.func @_gru_fused_kernel(%arg0: i32, %arg1: memref<64x128xf32, #tpu.memory_space<vmem>>, %arg2: memref<128x384xf32, #tpu.memory_space<vmem>>, %arg3: memref<128x384xf32, #tpu.memory_space<vmem>>, %arg4: memref<1x384xf32, #tpu.memory_space<vmem>>, %arg5: memref<1x128xf32, #tpu.memory_space<vmem>>, %arg6: memref<8x128xf32, #tpu.memory_space<vmem>>, %arg7: memref<64x384xf32, #tpu.memory_space<vmem>>, %arg8: memref<8x128xf32, #tpu.memory_space<vmem>>) attributes {dimension_semantics = [#tpu.dimension_semantics<arbitrary>], iteration_bounds = array<i64: 1>, scalar_prefetch = 0 : i64, scratch_operands = 2 : i64, tpu.core_type = #tpu.core_type<tc>, window_params = [{transform_indices = @transform_0, window_bounds = array<i64: 64, 128>}, {pipeline_mode = #tpu.pipeline_mode<synchronous>, transform_indices = @transform_1, window_bounds = array<i64: 128, 384>}, {pipeline_mode = #tpu.pipeline_mode<synchronous>, transform_indices = @transform_2, window_bounds = array<i64: 128, 384>}, {pipeline_mode = #tpu.pipeline_mode<synchronous>, transform_indices = @transform_3, window_bounds = array<i64: 1, 384>}, {pipeline_mode = #tpu.pipeline_mode<synchronous>, transform_indices = @transform_4, window_bounds = array<i64: 1, 128>}, {pipeline_mode = #tpu.pipeline_mode<synchronous>, transform_indices = @transform_5, window_bounds = array<i64: 8, 128>}]} {
    %c0_i32 = arith.constant 0 : i32
    %0 = arith.cmpi eq, %arg0, %c0_i32 : i32
    %1 = arith.extui %0 : i1 to i32
    %c0_i32_0 = arith.constant 0 : i32
    %2 = arith.cmpi ne, %1, %c0_i32_0 : i32
    scf.if %2 {
      %cst_59 = arith.constant 0.000000e+00 : f32
      %259 = vector.broadcast %cst_59 : f32 to vector<8x128xf32>
      %c0_60 = arith.constant 0 : index
      %c0_61 = arith.constant 0 : index
      %260 = vector.load %arg8[%c0_60, %c0_61] : memref<8x128xf32, #tpu.memory_space<vmem>>, vector<8x128xf32>
      tpu.vector_store %arg8[%c0_60, %c0_61], %259 {strides = array<i32>} : memref<8x128xf32, #tpu.memory_space<vmem>>, vector<8x128xf32>,
    } else {
    }
    %c0 = arith.constant 0 : index
    %c0_1 = arith.constant 0 : index
    %3 = vector.load %arg1[%c0, %c0_1] : memref<64x128xf32, #tpu.memory_space<vmem>>, vector<64x128xf32>
    %c0_2 = arith.constant 0 : index
    %c0_3 = arith.constant 0 : index
    %4 = vector.load %arg2[%c0_2, %c0_3] : memref<128x384xf32, #tpu.memory_space<vmem>>, vector<128x384xf32>
    %cst = arith.constant dense<0.000000e+00> : vector<64x384xf32>
    %5 = tpu.matmul %3, %4, %cst {dimension_numbers = #tpu.dot_dimension_numbers<[1], [0], [0], [1], [0, 0, 1, 1], [], []>} : vector<64x128xf32>, vector<128x384xf32>, vector<64x384xf32> -> vector<64x384xf32>
    %c0_4 = arith.constant 0 : index
    %c0_5 = arith.constant 0 : index
    %6 = vector.load %arg4[%c0_4, %c0_5] : memref<1x384xf32, #tpu.memory_space<vmem>>, vector<1x384xf32>
    %7 = vector.broadcast %6 : vector<1x384xf32> to vector<64x384xf32>
    %8 = arith.addf %5, %7 : vector<64x384xf32>
    %c0_6 = arith.constant 0 : index
    %c0_7 = arith.constant 0 : index
    %9 = vector.load %arg7[%c0_6, %c0_7] : memref<64x384xf32, #tpu.memory_space<vmem>>, vector<64x384xf32>
    tpu.vector_store %arg7[%c0_6, %c0_7], %8 {strides = array<i32>} : memref<64x384xf32, #tpu.memory_space<vmem>>, vector<64x384xf32>,
    %c0_8 = arith.constant 0 : index
    %c0_9 = arith.constant 0 : index
    %10 = vector.load %arg3[%c0_8, %c0_9] : memref<128x384xf32, #tpu.memory_space<vmem>>, vector<128x384xf32>
    %c0_10 = arith.constant 0 : index
    %c0_11 = arith.constant 0 : index
    %11 = vector.load %arg5[%c0_10, %c0_11] : memref<1x128xf32, #tpu.memory_space<vmem>>, vector<1x128xf32>
    %12 = vector.shape_cast %11 : vector<1x128xf32> to vector<1x128xf32>
    %13 = vector.broadcast %12 : vector<1x128xf32> to vector<8x128xf32>
    %c0_12 = arith.constant 0 : index
    %c0_13 = arith.constant 0 : index
    %14 = vector.load %arg8[%c0_12, %c0_13] : memref<8x128xf32, #tpu.memory_space<vmem>>, vector<8x128xf32>
    %c0_i32_14 = arith.constant 0 : i32
    %c8_i32 = arith.constant 8 : i32
    %15 = arith.muli %c0_i32_14, %c8_i32 : i32
    %16 = tpu.assume_multiple %15, 8 : i32
    %17 = arith.index_cast %16 : i32 to index
    %c0_15 = arith.constant 0 : index
    %18 = vector.load %arg7[%17, %c0_15] : memref<64x384xf32, #tpu.memory_space<vmem>>, vector<8x384xf32>
    %cst_16 = arith.constant dense<0.000000e+00> : vector<8x384xf32>
    %19 = tpu.matmul %14, %10, %cst_16 {dimension_numbers = #tpu.dot_dimension_numbers<[1], [0], [0], [1], [0, 0, 1, 1], [], []>} : vector<8x128xf32>, vector<128x384xf32>, vector<8x384xf32> -> vector<8x384xf32>
    %20 = vector.extract_strided_slice %18 {offsets = [0, 0], sizes = [8, 128], strides = [1, 1]} : vector<8x384xf32> to vector<8x128xf32>
    %21 = vector.extract_strided_slice %19 {offsets = [0, 0], sizes = [8, 128], strides = [1, 1]} : vector<8x384xf32> to vector<8x128xf32>
    %22 = arith.addf %20, %21 : vector<8x128xf32>
    %23 = arith.negf %22 : vector<8x128xf32>
    %24 = math.exp %23 : vector<8x128xf32>
    %cst_17 = arith.constant 1.000000e+00 : f32
    %25 = vector.broadcast %cst_17 : f32 to vector<8x128xf32>
    %26 = arith.addf %25, %24 : vector<8x128xf32>
    %27 = arith.divf %25, %26 : vector<8x128xf32>
    %28 = vector.extract_strided_slice %18 {offsets = [0, 128], sizes = [8, 128], strides = [1, 1]} : vector<8x384xf32> to vector<8x128xf32>
    %29 = vector.extract_strided_slice %19 {offsets = [0, 128], sizes = [8, 128], strides = [1, 1]} : vector<8x384xf32> to vector<8x128xf32>
    %30 = arith.addf %28, %29 : vector<8x128xf32>
    %31 = arith.negf %30 : vector<8x128xf32>
    %32 = math.exp %31 : vector<8x128xf32>
    %cst_18 = arith.constant 1.000000e+00 : f32
    %33 = vector.broadcast %cst_18 : f32 to vector<8x128xf32>
    %34 = arith.addf %33, %32 : vector<8x128xf32>
    %35 = arith.divf %33, %34 : vector<8x128xf32>
    %36 = vector.extract_strided_slice %18 {offsets = [0, 256], sizes = [8, 128], strides = [1, 1]} : vector<8x384xf32> to vector<8x128xf32>
    %37 = vector.extract_strided_slice %19 {offsets = [0, 256], sizes = [8, 128], strides = [1, 1]} : vector<8x384xf32> to vector<8x128xf32>
    %38 = arith.addf %37, %13 : vector<8x128xf32>
    %39 = arith.mulf %27, %38 : vector<8x128xf32>
    %40 = arith.addf %36, %39 : vector<8x128xf32>
    %41 = math.tanh %40 : vector<8x128xf32>
    %42 = arith.subf %14, %41 : vector<8x128xf32>
    %43 = arith.mulf %35, %42 : vector<8x128xf32>
    %44 = arith.addf %41, %43 : vector<8x128xf32>
    %c1_i32 = arith.constant 1 : i32
    %c8_i32_19 = arith.constant 8 : i32
    %45 = arith.muli %c1_i32, %c8_i32_19 : i32
    %46 = tpu.assume_multiple %45, 8 : i32
    %47 = arith.index_cast %46 : i32 to index
    %c0_20 = arith.constant 0 : index
    %48 = vector.load %arg7[%47, %c0_20] : memref<64x384xf32, #tpu.memory_space<vmem>>, vector<8x384xf32>
    %cst_21 = arith.constant dense<0.000000e+00> : vector<8x384xf32>
    %49 = tpu.matmul %44, %10, %cst_21 {dimension_numbers = #tpu.dot_dimension_numbers<[1], [0], [0], [1], [0, 0, 1, 1], [], []>} : vector<8x128xf32>, vector<128x384xf32>, vector<8x384xf32> -> vector<8x384xf32>
    %50 = vector.extract_strided_slice %48 {offsets = [0, 0], sizes = [8, 128], strides = [1, 1]} : vector<8x384xf32> to vector<8x128xf32>
    %51 = vector.extract_strided_slice %49 {offsets = [0, 0], sizes = [8, 128], strides = [1, 1]} : vector<8x384xf32> to vector<8x128xf32>
    %52 = arith.addf %50, %51 : vector<8x128xf32>
    %53 = arith.negf %52 : vector<8x128xf32>
    %54 = math.exp %53 : vector<8x128xf32>
    %cst_22 = arith.constant 1.000000e+00 : f32
    %55 = vector.broadcast %cst_22 : f32 to vector<8x128xf32>
    %56 = arith.addf %55, %54 : vector<8x128xf32>
    %57 = arith.divf %55, %56 : vector<8x128xf32>
    %58 = vector.extract_strided_slice %48 {offsets = [0, 128], sizes = [8, 128], strides = [1, 1]} : vector<8x384xf32> to vector<8x128xf32>
    %59 = vector.extract_strided_slice %49 {offsets = [0, 128], sizes = [8, 128], strides = [1, 1]} : vector<8x384xf32> to vector<8x128xf32>
    %60 = arith.addf %58, %59 : vector<8x128xf32>
    %61 = arith.negf %60 : vector<8x128xf32>
    %62 = math.exp %61 : vector<8x128xf32>
    %cst_23 = arith.constant 1.000000e+00 : f32
    %63 = vector.broadcast %cst_23 : f32 to vector<8x128xf32>
    %64 = arith.addf %63, %62 : vector<8x128xf32>
    %65 = arith.divf %63, %64 : vector<8x128xf32>
    %66 = vector.extract_strided_slice %48 {offsets = [0, 256], sizes = [8, 128], strides = [1, 1]} : vector<8x384xf32> to vector<8x128xf32>
    %67 = vector.extract_strided_slice %49 {offsets = [0, 256], sizes = [8, 128], strides = [1, 1]} : vector<8x384xf32> to vector<8x128xf32>
    %68 = arith.addf %67, %13 : vector<8x128xf32>
    %69 = arith.mulf %57, %68 : vector<8x128xf32>
    %70 = arith.addf %66, %69 : vector<8x128xf32>
    %71 = math.tanh %70 : vector<8x128xf32>
    %72 = arith.subf %44, %71 : vector<8x128xf32>
    %73 = arith.mulf %65, %72 : vector<8x128xf32>
    %74 = arith.addf %71, %73 : vector<8x128xf32>
    %c2_i32 = arith.constant 2 : i32
    %c8_i32_24 = arith.constant 8 : i32
    %75 = arith.muli %c2_i32, %c8_i32_24 : i32
    %76 = tpu.assume_multiple %75, 8 : i32
    %77 = arith.index_cast %76 : i32 to index
    %c0_25 = arith.constant 0 : index
    %78 = vector.load %arg7[%77, %c0_25] : memref<64x384xf32, #tpu.memory_space<vmem>>, vector<8x384xf32>
    %cst_26 = arith.constant dense<0.000000e+00> : vector<8x384xf32>
    %79 = tpu.matmul %74, %10, %cst_26 {dimension_numbers = #tpu.dot_dimension_numbers<[1], [0], [0], [1], [0, 0, 1, 1], [], []>} : vector<8x128xf32>, vector<128x384xf32>, vector<8x384xf32> -> vector<8x384xf32>
    %80 = vector.extract_strided_slice %78 {offsets = [0, 0], sizes = [8, 128], strides = [1, 1]} : vector<8x384xf32> to vector<8x128xf32>
    %81 = vector.extract_strided_slice %79 {offsets = [0, 0], sizes = [8, 128], strides = [1, 1]} : vector<8x384xf32> to vector<8x128xf32>
    %82 = arith.addf %80, %81 : vector<8x128xf32>
    %83 = arith.negf %82 : vector<8x128xf32>
    %84 = math.exp %83 : vector<8x128xf32>
    %cst_27 = arith.constant 1.000000e+00 : f32
    %85 = vector.broadcast %cst_27 : f32 to vector<8x128xf32>
    %86 = arith.addf %85, %84 : vector<8x128xf32>
    %87 = arith.divf %85, %86 : vector<8x128xf32>
    %88 = vector.extract_strided_slice %78 {offsets = [0, 128], sizes = [8, 128], strides = [1, 1]} : vector<8x384xf32> to vector<8x128xf32>
    %89 = vector.extract_strided_slice %79 {offsets = [0, 128], sizes = [8, 128], strides = [1, 1]} : vector<8x384xf32> to vector<8x128xf32>
    %90 = arith.addf %88, %89 : vector<8x128xf32>
    %91 = arith.negf %90 : vector<8x128xf32>
    %92 = math.exp %91 : vector<8x128xf32>
    %cst_28 = arith.constant 1.000000e+00 : f32
    %93 = vector.broadcast %cst_28 : f32 to vector<8x128xf32>
    %94 = arith.addf %93, %92 : vector<8x128xf32>
    %95 = arith.divf %93, %94 : vector<8x128xf32>
    %96 = vector.extract_strided_slice %78 {offsets = [0, 256], sizes = [8, 128], strides = [1, 1]} : vector<8x384xf32> to vector<8x128xf32>
    %97 = vector.extract_strided_slice %79 {offsets = [0, 256], sizes = [8, 128], strides = [1, 1]} : vector<8x384xf32> to vector<8x128xf32>
    %98 = arith.addf %97, %13 : vector<8x128xf32>
    %99 = arith.mulf %87, %98 : vector<8x128xf32>
    %100 = arith.addf %96, %99 : vector<8x128xf32>
    %101 = math.tanh %100 : vector<8x128xf32>
    %102 = arith.subf %74, %101 : vector<8x128xf32>
    %103 = arith.mulf %95, %102 : vector<8x128xf32>
    %104 = arith.addf %101, %103 : vector<8x128xf32>
    %c3_i32 = arith.constant 3 : i32
    %c8_i32_29 = arith.constant 8 : i32
    %105 = arith.muli %c3_i32, %c8_i32_29 : i32
    %106 = tpu.assume_multiple %105, 8 : i32
    %107 = arith.index_cast %106 : i32 to index
    %c0_30 = arith.constant 0 : index
    %108 = vector.load %arg7[%107, %c0_30] : memref<64x384xf32, #tpu.memory_space<vmem>>, vector<8x384xf32>
    %cst_31 = arith.constant dense<0.000000e+00> : vector<8x384xf32>
    %109 = tpu.matmul %104, %10, %cst_31 {dimension_numbers = #tpu.dot_dimension_numbers<[1], [0], [0], [1], [0, 0, 1, 1], [], []>} : vector<8x128xf32>, vector<128x384xf32>, vector<8x384xf32> -> vector<8x384xf32>
    %110 = vector.extract_strided_slice %108 {offsets = [0, 0], sizes = [8, 128], strides = [1, 1]} : vector<8x384xf32> to vector<8x128xf32>
    %111 = vector.extract_strided_slice %109 {offsets = [0, 0], sizes = [8, 128], strides = [1, 1]} : vector<8x384xf32> to vector<8x128xf32>
    %112 = arith.addf %110, %111 : vector<8x128xf32>
    %113 = arith.negf %112 : vector<8x128xf32>
    %114 = math.exp %113 : vector<8x128xf32>
    %cst_32 = arith.constant 1.000000e+00 : f32
    %115 = vector.broadcast %cst_32 : f32 to vector<8x128xf32>
    %116 = arith.addf %115, %114 : vector<8x128xf32>
    %117 = arith.divf %115, %116 : vector<8x128xf32>
    %118 = vector.extract_strided_slice %108 {offsets = [0, 128], sizes = [8, 128], strides = [1, 1]} : vector<8x384xf32> to vector<8x128xf32>
    %119 = vector.extract_strided_slice %109 {offsets = [0, 128], sizes = [8, 128], strides = [1, 1]} : vector<8x384xf32> to vector<8x128xf32>
    %120 = arith.addf %118, %119 : vector<8x128xf32>
    %121 = arith.negf %120 : vector<8x128xf32>
    %122 = math.exp %121 : vector<8x128xf32>
    %cst_33 = arith.constant 1.000000e+00 : f32
    %123 = vector.broadcast %cst_33 : f32 to vector<8x128xf32>
    %124 = arith.addf %123, %122 : vector<8x128xf32>
    %125 = arith.divf %123, %124 : vector<8x128xf32>
    %126 = vector.extract_strided_slice %108 {offsets = [0, 256], sizes = [8, 128], strides = [1, 1]} : vector<8x384xf32> to vector<8x128xf32>
    %127 = vector.extract_strided_slice %109 {offsets = [0, 256], sizes = [8, 128], strides = [1, 1]} : vector<8x384xf32> to vector<8x128xf32>
    %128 = arith.addf %127, %13 : vector<8x128xf32>
    %129 = arith.mulf %117, %128 : vector<8x128xf32>
    %130 = arith.addf %126, %129 : vector<8x128xf32>
    %131 = math.tanh %130 : vector<8x128xf32>
    %132 = arith.subf %104, %131 : vector<8x128xf32>
    %133 = arith.mulf %125, %132 : vector<8x128xf32>
    %134 = arith.addf %131, %133 : vector<8x128xf32>
    %c4_i32 = arith.constant 4 : i32
    %c8_i32_34 = arith.constant 8 : i32
    %135 = arith.muli %c4_i32, %c8_i32_34 : i32
    %136 = tpu.assume_multiple %135, 8 : i32
    %137 = arith.index_cast %136 : i32 to index
    %c0_35 = arith.constant 0 : index
    %138 = vector.load %arg7[%137, %c0_35] : memref<64x384xf32, #tpu.memory_space<vmem>>, vector<8x384xf32>
    %cst_36 = arith.constant dense<0.000000e+00> : vector<8x384xf32>
    %139 = tpu.matmul %134, %10, %cst_36 {dimension_numbers = #tpu.dot_dimension_numbers<[1], [0], [0], [1], [0, 0, 1, 1], [], []>} : vector<8x128xf32>, vector<128x384xf32>, vector<8x384xf32> -> vector<8x384xf32>
    %140 = vector.extract_strided_slice %138 {offsets = [0, 0], sizes = [8, 128], strides = [1, 1]} : vector<8x384xf32> to vector<8x128xf32>
    %141 = vector.extract_strided_slice %139 {offsets = [0, 0], sizes = [8, 128], strides = [1, 1]} : vector<8x384xf32> to vector<8x128xf32>
    %142 = arith.addf %140, %141 : vector<8x128xf32>
    %143 = arith.negf %142 : vector<8x128xf32>
    %144 = math.exp %143 : vector<8x128xf32>
    %cst_37 = arith.constant 1.000000e+00 : f32
    %145 = vector.broadcast %cst_37 : f32 to vector<8x128xf32>
    %146 = arith.addf %145, %144 : vector<8x128xf32>
    %147 = arith.divf %145, %146 : vector<8x128xf32>
    %148 = vector.extract_strided_slice %138 {offsets = [0, 128], sizes = [8, 128], strides = [1, 1]} : vector<8x384xf32> to vector<8x128xf32>
    %149 = vector.extract_strided_slice %139 {offsets = [0, 128], sizes = [8, 128], strides = [1, 1]} : vector<8x384xf32> to vector<8x128xf32>
    %150 = arith.addf %148, %149 : vector<8x128xf32>
    %151 = arith.negf %150 : vector<8x128xf32>
    %152 = math.exp %151 : vector<8x128xf32>
    %cst_38 = arith.constant 1.000000e+00 : f32
    %153 = vector.broadcast %cst_38 : f32 to vector<8x128xf32>
    %154 = arith.addf %153, %152 : vector<8x128xf32>
    %155 = arith.divf %153, %154 : vector<8x128xf32>
    %156 = vector.extract_strided_slice %138 {offsets = [0, 256], sizes = [8, 128], strides = [1, 1]} : vector<8x384xf32> to vector<8x128xf32>
    %157 = vector.extract_strided_slice %139 {offsets = [0, 256], sizes = [8, 128], strides = [1, 1]} : vector<8x384xf32> to vector<8x128xf32>
    %158 = arith.addf %157, %13 : vector<8x128xf32>
    %159 = arith.mulf %147, %158 : vector<8x128xf32>
    %160 = arith.addf %156, %159 : vector<8x128xf32>
    %161 = math.tanh %160 : vector<8x128xf32>
    %162 = arith.subf %134, %161 : vector<8x128xf32>
    %163 = arith.mulf %155, %162 : vector<8x128xf32>
    %164 = arith.addf %161, %163 : vector<8x128xf32>
    %c5_i32 = arith.constant 5 : i32
    %c8_i32_39 = arith.constant 8 : i32
    %165 = arith.muli %c5_i32, %c8_i32_39 : i32
    %166 = tpu.assume_multiple %165, 8 : i32
    %167 = arith.index_cast %166 : i32 to index
    %c0_40 = arith.constant 0 : index
    %168 = vector.load %arg7[%167, %c0_40] : memref<64x384xf32, #tpu.memory_space<vmem>>, vector<8x384xf32>
    %cst_41 = arith.constant dense<0.000000e+00> : vector<8x384xf32>
    %169 = tpu.matmul %164, %10, %cst_41 {dimension_numbers = #tpu.dot_dimension_numbers<[1], [0], [0], [1], [0, 0, 1, 1], [], []>} : vector<8x128xf32>, vector<128x384xf32>, vector<8x384xf32> -> vector<8x384xf32>
    %170 = vector.extract_strided_slice %168 {offsets = [0, 0], sizes = [8, 128], strides = [1, 1]} : vector<8x384xf32> to vector<8x128xf32>
    %171 = vector.extract_strided_slice %169 {offsets = [0, 0], sizes = [8, 128], strides = [1, 1]} : vector<8x384xf32> to vector<8x128xf32>
    %172 = arith.addf %170, %171 : vector<8x128xf32>
    %173 = arith.negf %172 : vector<8x128xf32>
    %174 = math.exp %173 : vector<8x128xf32>
    %cst_42 = arith.constant 1.000000e+00 : f32
    %175 = vector.broadcast %cst_42 : f32 to vector<8x128xf32>
    %176 = arith.addf %175, %174 : vector<8x128xf32>
    %177 = arith.divf %175, %176 : vector<8x128xf32>
    %178 = vector.extract_strided_slice %168 {offsets = [0, 128], sizes = [8, 128], strides = [1, 1]} : vector<8x384xf32> to vector<8x128xf32>
    %179 = vector.extract_strided_slice %169 {offsets = [0, 128], sizes = [8, 128], strides = [1, 1]} : vector<8x384xf32> to vector<8x128xf32>
    %180 = arith.addf %178, %179 : vector<8x128xf32>
    %181 = arith.negf %180 : vector<8x128xf32>
    %182 = math.exp %181 : vector<8x128xf32>
    %cst_43 = arith.constant 1.000000e+00 : f32
    %183 = vector.broadcast %cst_43 : f32 to vector<8x128xf32>
    %184 = arith.addf %183, %182 : vector<8x128xf32>
    %185 = arith.divf %183, %184 : vector<8x128xf32>
    %186 = vector.extract_strided_slice %168 {offsets = [0, 256], sizes = [8, 128], strides = [1, 1]} : vector<8x384xf32> to vector<8x128xf32>
    %187 = vector.extract_strided_slice %169 {offsets = [0, 256], sizes = [8, 128], strides = [1, 1]} : vector<8x384xf32> to vector<8x128xf32>
    %188 = arith.addf %187, %13 : vector<8x128xf32>
    %189 = arith.mulf %177, %188 : vector<8x128xf32>
    %190 = arith.addf %186, %189 : vector<8x128xf32>
    %191 = math.tanh %190 : vector<8x128xf32>
    %192 = arith.subf %164, %191 : vector<8x128xf32>
    %193 = arith.mulf %185, %192 : vector<8x128xf32>
    %194 = arith.addf %191, %193 : vector<8x128xf32>
    %c6_i32 = arith.constant 6 : i32
    %c8_i32_44 = arith.constant 8 : i32
    %195 = arith.muli %c6_i32, %c8_i32_44 : i32
    %196 = tpu.assume_multiple %195, 8 : i32
    %197 = arith.index_cast %196 : i32 to index
    %c0_45 = arith.constant 0 : index
    %198 = vector.load %arg7[%197, %c0_45] : memref<64x384xf32, #tpu.memory_space<vmem>>, vector<8x384xf32>
    %cst_46 = arith.constant dense<0.000000e+00> : vector<8x384xf32>
    %199 = tpu.matmul %194, %10, %cst_46 {dimension_numbers = #tpu.dot_dimension_numbers<[1], [0], [0], [1], [0, 0, 1, 1], [], []>} : vector<8x128xf32>, vector<128x384xf32>, vector<8x384xf32> -> vector<8x384xf32>
    %200 = vector.extract_strided_slice %198 {offsets = [0, 0], sizes = [8, 128], strides = [1, 1]} : vector<8x384xf32> to vector<8x128xf32>
    %201 = vector.extract_strided_slice %199 {offsets = [0, 0], sizes = [8, 128], strides = [1, 1]} : vector<8x384xf32> to vector<8x128xf32>
    %202 = arith.addf %200, %201 : vector<8x128xf32>
    %203 = arith.negf %202 : vector<8x128xf32>
    %204 = math.exp %203 : vector<8x128xf32>
    %cst_47 = arith.constant 1.000000e+00 : f32
    %205 = vector.broadcast %cst_47 : f32 to vector<8x128xf32>
    %206 = arith.addf %205, %204 : vector<8x128xf32>
    %207 = arith.divf %205, %206 : vector<8x128xf32>
    %208 = vector.extract_strided_slice %198 {offsets = [0, 128], sizes = [8, 128], strides = [1, 1]} : vector<8x384xf32> to vector<8x128xf32>
    %209 = vector.extract_strided_slice %199 {offsets = [0, 128], sizes = [8, 128], strides = [1, 1]} : vector<8x384xf32> to vector<8x128xf32>
    %210 = arith.addf %208, %209 : vector<8x128xf32>
    %211 = arith.negf %210 : vector<8x128xf32>
    %212 = math.exp %211 : vector<8x128xf32>
    %cst_48 = arith.constant 1.000000e+00 : f32
    %213 = vector.broadcast %cst_48 : f32 to vector<8x128xf32>
    %214 = arith.addf %213, %212 : vector<8x128xf32>
    %215 = arith.divf %213, %214 : vector<8x128xf32>
    %216 = vector.extract_strided_slice %198 {offsets = [0, 256], sizes = [8, 128], strides = [1, 1]} : vector<8x384xf32> to vector<8x128xf32>
    %217 = vector.extract_strided_slice %199 {offsets = [0, 256], sizes = [8, 128], strides = [1, 1]} : vector<8x384xf32> to vector<8x128xf32>
    %218 = arith.addf %217, %13 : vector<8x128xf32>
    %219 = arith.mulf %207, %218 : vector<8x128xf32>
    %220 = arith.addf %216, %219 : vector<8x128xf32>
    %221 = math.tanh %220 : vector<8x128xf32>
    %222 = arith.subf %194, %221 : vector<8x128xf32>
    %223 = arith.mulf %215, %222 : vector<8x128xf32>
    %224 = arith.addf %221, %223 : vector<8x128xf32>
    %c7_i32 = arith.constant 7 : i32
    %c8_i32_49 = arith.constant 8 : i32
    %225 = arith.muli %c7_i32, %c8_i32_49 : i32
    %226 = tpu.assume_multiple %225, 8 : i32
    %227 = arith.index_cast %226 : i32 to index
    %c0_50 = arith.constant 0 : index
    %228 = vector.load %arg7[%227, %c0_50] : memref<64x384xf32, #tpu.memory_space<vmem>>, vector<8x384xf32>
    %cst_51 = arith.constant dense<0.000000e+00> : vector<8x384xf32>
    %229 = tpu.matmul %224, %10, %cst_51 {dimension_numbers = #tpu.dot_dimension_numbers<[1], [0], [0], [1], [0, 0, 1, 1], [], []>} : vector<8x128xf32>, vector<128x384xf32>, vector<8x384xf32> -> vector<8x384xf32>
    %230 = vector.extract_strided_slice %228 {offsets = [0, 0], sizes = [8, 128], strides = [1, 1]} : vector<8x384xf32> to vector<8x128xf32>
    %231 = vector.extract_strided_slice %229 {offsets = [0, 0], sizes = [8, 128], strides = [1, 1]} : vector<8x384xf32> to vector<8x128xf32>
    %232 = arith.addf %230, %231 : vector<8x128xf32>
    %233 = arith.negf %232 : vector<8x128xf32>
    %234 = math.exp %233 : vector<8x128xf32>
    %cst_52 = arith.constant 1.000000e+00 : f32
    %235 = vector.broadcast %cst_52 : f32 to vector<8x128xf32>
    %236 = arith.addf %235, %234 : vector<8x128xf32>
    %237 = arith.divf %235, %236 : vector<8x128xf32>
    %238 = vector.extract_strided_slice %228 {offsets = [0, 128], sizes = [8, 128], strides = [1, 1]} : vector<8x384xf32> to vector<8x128xf32>
    %239 = vector.extract_strided_slice %229 {offsets = [0, 128], sizes = [8, 128], strides = [1, 1]} : vector<8x384xf32> to vector<8x128xf32>
    %240 = arith.addf %238, %239 : vector<8x128xf32>
    %241 = arith.negf %240 : vector<8x128xf32>
    %242 = math.exp %241 : vector<8x128xf32>
    %cst_53 = arith.constant 1.000000e+00 : f32
    %243 = vector.broadcast %cst_53 : f32 to vector<8x128xf32>
    %244 = arith.addf %243, %242 : vector<8x128xf32>
    %245 = arith.divf %243, %244 : vector<8x128xf32>
    %246 = vector.extract_strided_slice %228 {offsets = [0, 256], sizes = [8, 128], strides = [1, 1]} : vector<8x384xf32> to vector<8x128xf32>
    %247 = vector.extract_strided_slice %229 {offsets = [0, 256], sizes = [8, 128], strides = [1, 1]} : vector<8x384xf32> to vector<8x128xf32>
    %248 = arith.addf %247, %13 : vector<8x128xf32>
    %249 = arith.mulf %237, %248 : vector<8x128xf32>
    %250 = arith.addf %246, %249 : vector<8x128xf32>
    %251 = math.tanh %250 : vector<8x128xf32>
    %252 = arith.subf %224, %251 : vector<8x128xf32>
    %253 = arith.mulf %245, %252 : vector<8x128xf32>
    %254 = arith.addf %251, %253 : vector<8x128xf32>
    %c8_i32_54 = arith.constant 8 : i32
    %c0_55 = arith.constant 0 : index
    %c0_56 = arith.constant 0 : index
    %255 = vector.load %arg8[%c0_55, %c0_56] : memref<8x128xf32, #tpu.memory_space<vmem>>, vector<8x128xf32>
    tpu.vector_store %arg8[%c0_55, %c0_56], %254 {strides = array<i32>} : memref<8x128xf32, #tpu.memory_space<vmem>>, vector<8x128xf32>,
    %c0_i32_57 = arith.constant 0 : i32
    %256 = arith.cmpi eq, %arg0, %c0_i32_57 : i32
    %257 = arith.extui %256 : i1 to i32
    %c0_i32_58 = arith.constant 0 : i32
    %258 = arith.cmpi ne, %257, %c0_i32_58 : i32
    scf.if %258 {
      %c0_59 = arith.constant 0 : index
      %c0_60 = arith.constant 0 : index
      %259 = vector.load %arg8[%c0_59, %c0_60] : memref<8x128xf32, #tpu.memory_space<vmem>>, vector<8x128xf32>
      %c0_61 = arith.constant 0 : index
      %c0_62 = arith.constant 0 : index
      %260 = vector.load %arg6[%c0_61, %c0_62] : memref<8x128xf32, #tpu.memory_space<vmem>>, vector<8x128xf32>
      tpu.vector_store %arg6[%c0_61, %c0_62], %259 {strides = array<i32>} : memref<8x128xf32, #tpu.memory_space<vmem>>, vector<8x128xf32>,
    } else {
    }
    return
  }
  func.func @transform_0(%arg0: i32) -> (i32, i32) {
    %c0_i32 = arith.constant 0 : i32
    %c0_i32_0 = arith.constant 0 : i32
    return %arg0, %c0_i32 : i32, i32
  }
  func.func @transform_1(%arg0: i32) -> (i32, i32) {
    %c0_i32 = arith.constant 0 : i32
    %c0_i32_0 = arith.constant 0 : i32
    %c0_i32_1 = arith.constant 0 : i32
    return %c0_i32, %c0_i32_0 : i32, i32
  }
  func.func @transform_2(%arg0: i32) -> (i32, i32) {
    %c0_i32 = arith.constant 0 : i32
    %c0_i32_0 = arith.constant 0 : i32
    %c0_i32_1 = arith.constant 0 : i32
    return %c0_i32, %c0_i32_0 : i32, i32
  }
  func.func @transform_3(%arg0: i32) -> (i32, i32) {
    %c0_i32 = arith.constant 0 : i32
    %c0_i32_0 = arith.constant 0 : i32
    %c0_i32_1 = arith.constant 0 : i32
    return %c0_i32, %c0_i32_0 : i32, i32
  }
  func.func @transform_4(%arg0: i32) -> (i32, i32) {
    %c0_i32 = arith.constant 0 : i32
    %c0_i32_0 = arith.constant 0 : i32
    %c0_i32_1 = arith.constant 0 : i32
    return %c0_i32, %c0_i32_0 : i32, i32
  }
  func.func @transform_5(%arg0: i32) -> (i32, i32) {
    %c0_i32 = arith.constant 0 : i32
    %c0_i32_0 = arith.constant 0 : i32
    %c0_i32_1 = arith.constant 0 : i32
    return %c0_i32, %c0_i32_0 : i32, i32
  }
}

</mosaic_0001>

<bundles_post_ra>
// kernel: gru_encoder_forward.1
= control target key start
LH: loop header
LB: loop body
LE: loop exit
PB: predicated region body
PF: predicated region fallthrough
CT: control target
= control target key end

     0   :  { %v3754_v3 = vmov 0.0   ;;  %vm2390_vm0 = vmmov 0   ;;  %s3748_s1 = inlined_call_operand.vmem [shape: f32[128,384], index: 1, kind: input, shape index: {}]   ;;  %s3749_s0 = inlined_call_operand.vmem [shape: f32[64,128], index: 0, kind: input, shape index: {}]   ;;  %s3750_s2 = inlined_call_operand.vmem [shape: f32[128,384], index: 2, kind: input, shape index: {}]   ;;  %s3751_s3 = inlined_call_operand.vmem [shape: f32[1,384], index: 3, kind: input, shape index: {}]   ;;  %s3752_s4 = inlined_call_operand.vmem [shape: f32[1,128], index: 4, kind: input, shape index: {}]   ;;  %s3753_s5 = inlined_call_operand.vmem [shape: f32[8,128], index: 5, kind: output, shape index: {}]  }
   0x1   :  { %v79_v0 = vld [vmem:[%s3748_s1 + $0x170] sm:$0xff]  ;;  %v78_v1 = vld [vmem:[%s3748_s1 + $0x168] sm:$0xff]  ;;  %v76_v2 = vld [vmem:[%s3748_s1 + $0x158] sm:$0xff]  ;;  %162 = vmatprep.mubr.f32.mxu0 %v3754_v3 }
   0x2   :  { %98 = vmatprep.subr.mxu0 %v79_v0  ;;  %v75_v4 = vld [vmem:[%s3748_s1 + $0x150] sm:$0xff]  ;;  %v73_v5 = vld [vmem:[%s3748_s1 + $0x140] sm:$0xff]  ;;  %v72_v6 = vld [vmem:[%s3748_s1 + $0x138] sm:$0xff] }
   0x3   :  { %99 = vmatpush1.msra.mxu0 %v78_v1  ;;  %v70_v7 = vld [vmem:[%s3748_s1 + $0x128] sm:$0xff]  ;;  %v69_v8 = vld [vmem:[%s3748_s1 + $0x120] sm:$0xff]  ;;  %v67_v9 = vld [vmem:[%s3748_s1 + $0x110] sm:$0xff] }
   0x4   :  { %100 = vmatprep.subr.mxu0 %v76_v2  ;;  %v66_v10 = vld [vmem:[%s3748_s1 + $0x108] sm:$0xff]  ;;  %v64_v11 = vld [vmem:[%s3748_s1 + $0xf8] sm:$0xff]  ;;  %v63_v12 = vld [vmem:[%s3748_s1 + $0xf0] sm:$0xff] }
   0x5   :  { %101 = vmatpush1.msra.mxu0 %v75_v4  ;;  %v61_v13 = vld [vmem:[%s3748_s1 + $0xe0] sm:$0xff]  ;;  %v80_v14 = vld [vmem:[%s3748_s1 + $0x178] sm:$0xff]  ;;  %v58_v17 = vld [vmem:[%s3748_s1 + $0xc8] sm:$0xff] }
   0x6   :  { %102 = vmatprep.subr.mxu0 %v73_v5  ;;  %v60_v15 = vld [vmem:[%s3748_s1 + $0xd8] sm:$0xff]  ;;  %1934 = vmatprep.subr.mxu1 %v80_v14  ;;  %v77_v16 = vld [vmem:[%s3748_s1 + $0x160] sm:$0xff]  ;;  %v74_v18 = vld [vmem:[%s3748_s1 + $0x148] sm:$0xff] }
   0x7   :  { %103 = vmatpush1.msra.mxu0 %v72_v6  ;;  %1935 = vmatpush3.msra.mxu1 %v80_v14  ;;  %v57_v19 = vld [vmem:[%s3748_s1 + $0xc0] sm:$0xff]  ;;  %v55_v20 = vld [vmem:[%s3748_s1 + $0xb0] sm:$0xff]  ;;  %v54_v22 = vld [vmem:[%s3748_s1 + $0xa8] sm:$0xff] }
   0x8   :  { %104 = vmatprep.subr.mxu0 %v70_v7  ;;  %1936 = vmatprep.subr.mxu1 %v77_v16  ;;  %v71_v21 = vld [vmem:[%s3748_s1 + $0x130] sm:$0xff]  ;;  %v52_v23 = vld [vmem:[%s3748_s1 + $0x98] sm:$0xff]  ;;  %v49_v26 = vld [vmem:[%s3748_s1 + $0x80] sm:$0xff] }
   0x9   :  { %105 = vmatpush1.msra.mxu0 %v69_v8  ;;  %1937 = vmatpush3.msra.mxu1 %v77_v16  ;;  %v68_v24 = vld [vmem:[%s3748_s1 + $0x118] sm:$0xff]  ;;  %v51_v25 = vld [vmem:[%s3748_s1 + $0x90] sm:$0xff]  ;;  %v65_v27 = vld [vmem:[%s3748_s1 + $0x100] sm:$0xff] }
   0xa   :  { %106 = vmatprep.subr.mxu0 %v67_v9  ;;  %1938 = vmatprep.subr.mxu1 %v74_v18  ;;  %v48_v28 = vld [vmem:[%s3748_s1 + $0x78] sm:$0xff]  ;;  %v46_v29 = vld [vmem:[%s3748_s1 + $0x68] sm:$0xff]  ;;  %v45_v31 = vld [vmem:[%s3748_s1 + $0x60] sm:$0xff] }
   0xb   :  { %107 = vmatpush1.msra.mxu0 %v66_v10  ;;  %1939 = vmatpush3.msra.mxu1 %v74_v18  ;;  %v62_v30 = vld [vmem:[%s3748_s1 + $0xe8] sm:$0xff]  ;;  %v43_v32 = vld [vmem:[%s3748_s1 + $0x50] sm:$0xff]  ;;  %v40_v35 = vld [vmem:[%s3748_s1 + $0x38] sm:$0xff] }
   0xc   :  { %108 = vmatprep.subr.mxu0 %v64_v11  ;;  %1940 = vmatprep.subr.mxu1 %v71_v21  ;;  %v59_v33 = vld [vmem:[%s3748_s1 + $0xd0] sm:$0xff]  ;;  %v42_v34 = vld [vmem:[%s3748_s1 + $0x48] sm:$0xff]  ;;  %v56_v36 = vld [vmem:[%s3748_s1 + $0xb8] sm:$0xff] }
   0xd   :  { %109 = vmatpush1.msra.mxu0 %v63_v12  ;;  %1941 = vmatpush3.msra.mxu1 %v71_v21  ;;  %v39_v37 = vld [vmem:[%s3748_s1 + $0x30] sm:$0xff]  ;;  %v37_v38 = vld [vmem:[%s3748_s1 + $0x20] sm:$0xff]  ;;  %v36_v40 = vld [vmem:[%s3748_s1 + $0x18] sm:$0xff] }
   0xe   :  { %110 = vmatprep.subr.mxu0 %v61_v13  ;;  %1942 = vmatprep.subr.mxu1 %v68_v24  ;;  %v53_v39 = vld [vmem:[%s3748_s1 + $0xa0] sm:$0xff]  ;;  %v34_v41 = vld [vmem:[%s3748_s1 + $0x8] sm:$0xff]  ;;  %v2559_v45 = vld [vmem:[%s3750_s2 + $0x170] sm:$0xff] }
   0xf   :  { %111 = vmatpush1.msra.mxu0 %v60_v15  ;;  %1943 = vmatpush3.msra.mxu1 %v68_v24  ;;  %v50_v42 = vld [vmem:[%s3748_s1 + $0x88] sm:$0xff]  ;;  %v33_v43 = vld [vmem:[%s3748_s1] sm:$0xff]  ;;  %3773 = vst [vmem:[#allocation4_spill] sm:$0xff] %v2559_v45  ;;  %v2569_v47 = vld [vmem:[%s3750_s2 + $0x158] sm:$0xff] }
  0x10   :  { %112 = vmatprep.subr.mxu0 %v58_v17  ;;  %1944 = vmatprep.subr.mxu1 %v65_v27  ;;  %v2554_v44 = vld [vmem:[%s3749_s0] sm:$0xff]  ;;  %v2564_v46 = vld [vmem:[%s3750_s2 + $0x168] sm:$0xff]  ;;  %v47_v48 = vld [vmem:[%s3748_s1 + $0x70] sm:$0xff] }
  0x11   :  { %113 = vmatpush1.msra.mxu0 %v57_v19  ;;  %1945 = vmatpush3.msra.mxu1 %v65_v27  ;;  %v2579_v49 = vld [vmem:[%s3750_s2 + $0x150] sm:$0xff]  ;;  %v2586_v50 = vld [vmem:[%s3749_s0 + $0x8] sm:$0xff]  ;;  %v2591_v51 = vld [vmem:[%s3750_s2 + $0x140] sm:$0xff] }
  0x12   :  { %114 = vmatprep.subr.mxu0 %v55_v20  ;;  %1946 = vmatprep.subr.mxu1 %v62_v30  ;;  %v2597_v52 = vld [vmem:[%s3750_s2 + $0x138] sm:$0xff]  ;;  %v2603_v53 = vld [vmem:[%s3750_s2 + $0x128] sm:$0xff]  ;;  %v2613_v55 = vld [vmem:[%s3750_s2 + $0x120] sm:$0xff] }
  0x13   :  { %115 = vmatpush1.msra.mxu0 %v54_v22  ;;  %1947 = vmatpush3.msra.mxu1 %v62_v30  ;;  %v44_v54 = vld [vmem:[%s3748_s1 + $0x58] sm:$0xff]  ;;  %v2620_v56 = vld [vmem:[%s3749_s0 + $0x10] sm:$0xff]  ;;  %v2631_v58 = vld [vmem:[%s3750_s2 + $0x108] sm:$0xff] }
  0x14   :  { %116 = vmatprep.subr.mxu0 %v52_v23  ;;  %1948 = vmatprep.subr.mxu1 %v59_v33  ;;  %v2625_v57 = vld [vmem:[%s3750_s2 + $0x110] sm:$0xff]  ;;  %v2637_v59 = vld [vmem:[%s3750_s2 + $0xf8] sm:$0xff]  ;;  %v41_v60 = vld [vmem:[%s3748_s1 + $0x40] sm:$0xff] }
  0x15   :  { %117 = vmatpush1.msra.mxu0 %v51_v25  ;;  %1949 = vmatpush3.msra.mxu1 %v59_v33  ;;  %v2647_v61 = vld [vmem:[%s3750_s2 + $0xf0] sm:$0xff]  ;;  %v2654_v62 = vld [vmem:[%s3749_s0 + $0x18] sm:$0xff]  ;;  %v2659_v63 = vld [vmem:[%s3750_s2 + $0xe0] sm:$0xff] }
  0x16   :  { %118 = vmatprep.subr.mxu0 %v49_v26  ;;  %1950 = vmatprep.subr.mxu1 %v56_v36  ;;  %v2665_v0 = vld [vmem:[%s3750_s2 + $0xd8] sm:$0xff]  ;;  %v2671_v1 = vld [vmem:[%s3750_s2 + $0xc8] sm:$0xff]  ;;  %v2681_v4 = vld [vmem:[%s3750_s2 + $0xc0] sm:$0xff] }
  0x17   :  { %119 = vmatpush1.msra.mxu0 %v48_v28  ;;  %1951 = vmatpush3.msra.mxu1 %v56_v36  ;;  %v38_v2 = vld [vmem:[%s3748_s1 + $0x28] sm:$0xff]  ;;  %v2688_v5 = vld [vmem:[%s3749_s0 + $0x20] sm:$0xff]  ;;  %v2693_v6 = vld [vmem:[%s3750_s2 + $0xb0] sm:$0xff] }
  0x18   :  { %120 = vmatprep.subr.mxu0 %v46_v29  ;;  %1952 = vmatprep.subr.mxu1 %v53_v39  ;;  %v2699_v7 = vld [vmem:[%s3750_s2 + $0xa8] sm:$0xff]  ;;  %v2705_v8 = vld [vmem:[%s3750_s2 + $0x98] sm:$0xff]  ;;  %v35_v9 = vld [vmem:[%s3748_s1 + $0x10] sm:$0xff] }
  0x19   :  { %121 = vmatpush1.msra.mxu0 %v45_v31  ;;  %1953 = vmatpush3.msra.mxu1 %v53_v39  ;;  %v2715_v10 = vld [vmem:[%s3750_s2 + $0x90] sm:$0xff]  ;;  %v30_v11 = vld [vmem:[%s3749_s0 + $0x28] sm:$0xff]  ;;  %v2725_v12 = vld [vmem:[%s3750_s2 + $0x80] sm:$0xff] }
  0x1a   :  { %122 = vmatprep.subr.mxu0 %v43_v32  ;;  %1954 = vmatprep.subr.mxu1 %v50_v42  ;;  %v2731_v13 = vld [vmem:[%s3750_s2 + $0x78] sm:$0xff]  ;;  %v2737_v14 = vld [vmem:[%s3750_s2 + $0x68] sm:$0xff]  ;;  %v2743_v15 = vld [vmem:[%s3750_s2 + $0x60] sm:$0xff] }
  0x1b   :  { %123 = vmatpush1.msra.mxu0 %v42_v34  ;;  %1955 = vmatpush3.msra.mxu1 %v50_v42  ;;  %v31_v16 = vld [vmem:[%s3749_s0 + $0x30] sm:$0xff]  ;;  %v2759_v18 = vld [vmem:[%s3750_s2 + $0x48] sm:$0xff]  ;;  %v2766_v19 = vld [vmem:[%s3750_s2 + $0x38] sm:$0xff]  ;;  %v83_v42 = vlaneseq }
  0x1c   :  { %124 = vmatprep.subr.mxu0 %v40_v35  ;;  %1956 = vmatprep.subr.mxu1 %v47_v48  ;;  %v2753_v17 = vld [vmem:[%s3750_s2 + $0x50] sm:$0xff]  ;;  %v2778_v21 = vld [vmem:[%s3750_s2 + $0x178] sm:$0xff]  ;;  %v2788_v23 = vld [vmem:[%s3750_s2 + $0x20] sm:$0xff] }
  0x1d   :  { %125 = vmatpush1.msra.mxu0 %v39_v37  ;;  %1957 = vmatpush3.msra.mxu1 %v47_v48  ;;  %v2773_v20 = vld [vmem:[%s3750_s2 + $0x30] sm:$0xff]  ;;  %v32_v22 = vld [vmem:[%s3749_s0 + $0x38] sm:$0xff]  ;;  %v2801_v25 = vld [vmem:[%s3750_s2 + $0x8] sm:$0xff] }
  0x1e   :  { %126 = vmatprep.subr.mxu0 %v37_v38  ;;  %1958 = vmatprep.subr.mxu1 %v44_v54  ;;  %v2794_v24 = vld [vmem:[%s3750_s2 + $0x18] sm:$0xff]  ;;  %3775 = vst [vmem:[#allocation6_spill] sm:$0xff] %v2801_v25  ;;  %v2808_v26 = vld [vmem:[%s3750_s2] sm:$0xff]  ;;  %v2822_v28 = vld [vmem:[%s3750_s2 + $0x148] sm:$0xff] }
  0x1f   :  { %127 = vmatpush1.msra.mxu0 %v36_v40  ;;  %1959 = vmatpush3.msra.mxu1 %v44_v54  ;;  %3774 = vst [vmem:[#allocation5_spill] sm:$0xff] %v2794_v24  ;;  %3776 = vst [vmem:[#allocation7_spill] sm:$0xff] %v2808_v26  ;;  %v2813_v27 = vld [vmem:[%s3750_s2 + $0x160] sm:$0xff]  ;;  %v2831_v29 = vld [vmem:[%s3750_s2 + $0x130] sm:$0xff] }
  0x20   :  { %128 = vmatprep.subr.mxu0 %v34_v41  ;;  %1960 = vmatprep.subr.mxu1 %v41_v60  ;;  %v2839_v30 = vld [vmem:[%s3750_s2 + $0x118] sm:$0xff]  ;;  %v2848_v31 = vld [vmem:[%s3750_s2 + $0x100] sm:$0xff]  ;;  %v2857_v32 = vld [vmem:[%s3750_s2 + $0xe8] sm:$0xff] }
  0x21   :  { %129 = vmatpush1.msra.mxu0 %v33_v43  ;;  %1961 = vmatpush3.msra.mxu1 %v41_v60  ;;  %v2864_v33 = vld [vmem:[%s3750_s2 + $0xd0] sm:$0xff]  ;;  %v2873_v34 = vld [vmem:[%s3750_s2 + $0xb8] sm:$0xff]  ;;  %v2882_v35 = vld [vmem:[%s3750_s2 + $0xa0] sm:$0xff]  ;;  %v84_v43 = vshrl.u32 %v83_v42, 7 }
  0x22   :  { %163 = vmatmul.mubr.f32.vlgmr.msra.gmra.mxu0 %v2554_v44  ;;  %402 = vmatprep.subr.mxu0 %v2559_v45  ;;  %v2891_v36 = vld [vmem:[%s3750_s2 + $0x88] sm:$0xff]  ;;  %v2900_v37 = vld [vmem:[%s3750_s2 + $0x70] sm:$0xff]  ;;  %v2909_v38 = vld [vmem:[%s3750_s2 + $0x58] sm:$0xff] }
  0x23   :  { %403 = vmatpush1.msra.mxu0 %v2564_v46  ;;  %168 = vmatprep.mubr.f32.mxu0 %v3754_v3  ;;  %v2918_v39 = vld [vmem:[%s3750_s2 + $0x40] sm:$0xff]  ;;  %v2927_v40 = vld [vmem:[%s3750_s2 + $0x28] sm:$0xff]  ;;  %v2936_v41 = vld [vmem:[%s3750_s2 + $0x10] sm:$0xff]  ;;  %v89_v54 = vsub.s32 1, %v84_v43 }
  0x24   :  { %404 = vmatprep.subr.mxu0 %v2569_v47  ;;  %1962 = vmatprep.subr.mxu1 %v38_v2  ;;  %3777 = vst [vmem:[#allocation8_spill] sm:$0xff] %v2927_v40  ;;  %3778 = vst [vmem:[#allocation9_spill] sm:$0xff] %v2936_v41  ;;  %v81_v48 = vld [vmem:[%s3751_s3] sm:$0x7] }
  0x25   :  { %405 = vmatpush1.msra.mxu0 %v2579_v49  ;;  %1963 = vmatpush3.msra.mxu1 %v38_v2  ;;  %v90_v2 = vrot.slane %v81_v48, %v89_v54 }
  0x26   :  { %169 = vmatmul.mubr.f32.gmra.mxu0 %v2586_v50  ;;  %406 = vmatprep.subr.mxu0 %v2591_v51 }
  0x27   :  { %407 = vmatpush1.msra.mxu0 %v2597_v52  ;;  %174 = vmatprep.mubr.f32.mxu0 %v3754_v3 }
  0x28   :  { %408 = vmatprep.subr.mxu0 %v2603_v53  ;;  %1964 = vmatprep.subr.mxu1 %v35_v9 }
  0x29   :  { %409 = vmatpush1.msra.mxu0 %v2613_v55  ;;  %1965 = vmatpush3.msra.mxu1 %v35_v9 }
  0x2a   :  { %175 = vmatmul.mubr.f32.gmra.mxu0 %v2620_v56  ;;  %410 = vmatprep.subr.mxu0 %v2625_v57 }
  0x2b   :  { %411 = vmatpush1.msra.mxu0 %v2631_v58  ;;  %180 = vmatprep.mubr.f32.mxu0 %v3754_v3 }
  0x2c   :  { %412 = vmatprep.subr.mxu0 %v2637_v59  ;;  %1966 = vmatprep.mubr.f32.mxu1 %v2554_v44  ;;  %v85_v44 = vsub.s32 0, %v84_v43 }
  0x2d   :  { %413 = vmatpush1.msra.mxu0 %v2647_v61  ;;  %1978 = vmatprep.subr.mxu1 %v3754_v3 }
  0x2e   :  { %181 = vmatmul.mubr.f32.gmra.mxu0 %v2654_v62  ;;  %414 = vmatprep.subr.mxu0 %v2659_v63  ;;  %v86_v60 = vrot.slane %v81_v48, %v85_v44 }
  0x2f   :  { %415 = vmatpush1.msra.mxu0 %v2665_v0  ;;  %186 = vmatprep.mubr.f32.mxu0 %v3754_v3 }
  0x30   :  { %416 = vmatprep.subr.mxu0 %v2671_v1  ;;  %1967 = vmatmul.mubr.f32.vlgmr.msra.gmra.mxu1 %v2586_v50 }
  0x31   :  { %417 = vmatpush1.msra.mxu0 %v2681_v4  ;;  %1979 = vmatpush3.msra.mxu1 %v2778_v21 }
  0x32   :  { %187 = vmatmul.mubr.f32.gmra.mxu0 %v2688_v5  ;;  %418 = vmatprep.subr.mxu0 %v2693_v6 }
  0x33   :  { %419 = vmatpush1.msra.mxu0 %v2699_v7  ;;  %192 = vmatprep.mubr.f32.mxu0 %v3754_v3 }
  0x34   :  { %420 = vmatprep.subr.mxu0 %v2705_v8  ;;  %1980 = vmatprep.subr.mxu1 %v3754_v3 }
  0x35   :  { %421 = vmatpush1.msra.mxu0 %v2715_v10  ;;  %1981 = vmatpush3.msra.mxu1 %v2813_v27 }
  0x36   :  { %193 = vmatmul.mubr.f32.gmra.mxu0 %v30_v11  ;;  %422 = vmatprep.subr.mxu0 %v2725_v12 }
  0x37   :  { %423 = vmatpush1.msra.mxu0 %v2731_v13  ;;  %198 = vmatprep.mubr.f32.mxu0 %v3754_v3 }
  0x38   :  { %424 = vmatprep.subr.mxu0 %v2737_v14  ;;  %1982 = vmatprep.subr.mxu1 %v3754_v3 }
  0x39   :  { %425 = vmatpush1.msra.mxu0 %v2743_v15  ;;  %1983 = vmatpush3.msra.mxu1 %v2822_v28 }
  0x3a   :  { %199 = vmatmul.mubr.f32.gmra.mxu0 %v31_v16  ;;  %426 = vmatprep.subr.mxu0 %v2753_v17 }
  0x3b   :  { %427 = vmatpush1.msra.mxu0 %v2759_v18  ;;  %204 = vmatprep.mubr.f32.mxu0 %v3754_v3 }
  0x3c   :  { %428 = vmatprep.subr.mxu0 %v2766_v19  ;;  %1969 = vmatprep.mubr.f32.mxu1 %v2620_v56 }
  0x3d   :  { %429 = vmatpush1.msra.mxu0 %v2773_v20  ;;  %1984 = vmatprep.subr.mxu1 %v3754_v3 }
  0x3e   :  { %205 = vmatmul.mubr.f32.gmra.mxu0 %v32_v22  ;;  %430 = vmatprep.subr.mxu0 %v2788_v23 }
  0x3f   :  { %431 = vmatpush1.msra.mxu0 %v2794_v24  ;;  %466 = vmatprep.mubr.f32.mxu0 %v3754_v3 }
  0x40   :  { %432 = vmatprep.subr.mxu0 %v2801_v25  ;;  %1970 = vmatmul.mubr.f32.gmra.mxu1 %v2654_v62 }
  0x41   :  { %433 = vmatpush1.msra.mxu0 %v2808_v26  ;;  %1985 = vmatpush3.msra.mxu1 %v2831_v29 }
  0x42   :  { %467 = vmatmul.mubr.f32.vlgmr.msra.gmra.mxu0 %v3754_v3  ;;  %1972 = vmatprep.mubr.f32.mxu1 %v2688_v5 }
  0x43   :  { %1986 = vmatprep.subr.mxu1 %v3754_v3  ;;  %570 = vmatprep.subr.mxu0 %v2559_v45 }
  0x44   :  { %1987 = vmatpush3.msra.mxu1 %v2839_v30  ;;  %571 = vmatpush1.msra.mxu0 %v2564_v46 }
  0x45   :  { %1988 = vmatprep.subr.mxu1 %v3754_v3  ;;  %1973 = vmatmul.mubr.f32.gmra.mxu1 %v30_v11 }
  0x46   :  { %1989 = vmatpush3.msra.mxu1 %v2848_v31  ;;  %1975 = vmatprep.mubr.f32.mxu1 %v31_v16 }
  0x47   :  { %1990 = vmatprep.subr.mxu1 %v3754_v3  ;;  %572 = vmatprep.subr.mxu0 %v2569_v47 }
  0x48   :  { %1991 = vmatpush3.msra.mxu1 %v2857_v32  ;;  %573 = vmatpush1.msra.mxu0 %v2579_v49 }
  0x49   :  { %1992 = vmatprep.subr.mxu1 %v3754_v3  ;;  %1976 = vmatmul.mubr.f32.gmra.mxu1 %v32_v22 }
  0x4a   :  { %1993 = vmatpush3.msra.mxu1 %v2864_v33  ;;  %2010 = vmatprep.mubr.msk.f32.mxu1 %vm2390_vm0, %v3754_v3 }
  0x4b   :  { %1994 = vmatprep.subr.mxu1 %v3754_v3  ;;  %574 = vmatprep.subr.mxu0 %v2591_v51 }
  0x4c   :  { %1995 = vmatpush3.msra.mxu1 %v2873_v34  ;;  %575 = vmatpush1.msra.mxu0 %v2597_v52 }
  0x4d   :  { %1996 = vmatprep.subr.mxu1 %v3754_v3  ;;  %576 = vmatprep.subr.mxu0 %v2603_v53 }
  0x4e   :  { %1997 = vmatpush3.msra.mxu1 %v2882_v35  ;;  %577 = vmatpush1.msra.mxu0 %v2613_v55 }
  0x4f   :  { %1998 = vmatprep.subr.mxu1 %v3754_v3  ;;  %578 = vmatprep.subr.mxu0 %v2625_v57 }
  0x50   :  { %1999 = vmatpush3.msra.mxu1 %v2891_v36  ;;  %579 = vmatpush1.msra.mxu0 %v2631_v58 }
  0x51   :  { %2000 = vmatprep.subr.mxu1 %v3754_v3  ;;  %580 = vmatprep.subr.mxu0 %v2637_v59 }
  0x52   :  { %2001 = vmatpush3.msra.mxu1 %v2900_v37  ;;  %581 = vmatpush1.msra.mxu0 %v2647_v61 }
  0x53   :  { %2002 = vmatprep.subr.mxu1 %v3754_v3  ;;  %582 = vmatprep.subr.mxu0 %v2659_v63 }
  0x54   :  { %2003 = vmatpush3.msra.mxu1 %v2909_v38  ;;  %583 = vmatpush1.msra.mxu0 %v2665_v0 }
  0x55   :  { %2004 = vmatprep.subr.mxu1 %v3754_v3  ;;  %584 = vmatprep.subr.mxu0 %v2671_v1 }
  0x56   :  { %2005 = vmatpush3.msra.mxu1 %v2918_v39  ;;  %585 = vmatpush1.msra.mxu0 %v2681_v4 }
  0x57   :  { %2006 = vmatprep.subr.mxu1 %v3754_v3  ;;  %586 = vmatprep.subr.mxu0 %v2693_v6 }
  0x58   :  { %2007 = vmatpush3.msra.mxu1 %v2927_v40  ;;  %587 = vmatpush1.msra.mxu0 %v2699_v7 }
  0x59   :  { %2008 = vmatprep.subr.mxu1 %v3754_v3  ;;  %588 = vmatprep.subr.mxu0 %v2705_v8 }
  0x5a   :  { %2009 = vmatpush3.msra.mxu1 %v2936_v41  ;;  %589 = vmatpush1.msra.mxu0 %v2715_v10 }
  0x5b   :  { %2011 = vmatmul.mubr.f32.vlgmr.msra.gmra.mxu1 %v3754_v3  ;;  %2013 = vmatprep.subr.mxu1 %v3754_v3 }
  0x5c   :  { %2014 = vmatpush3.msra.mxu1 %v2778_v21  ;;  %590 = vmatprep.subr.mxu0 %v2725_v12 }
  0x5d   :  { %2015 = vmatprep.subr.mxu1 %v3754_v3  ;;  %591 = vmatpush1.msra.mxu0 %v2731_v13 }
  0x5e   :  { %2016 = vmatpush3.msra.mxu1 %v2813_v27  ;;  %592 = vmatprep.subr.mxu0 %v2737_v14 }
  0x5f   :  { %2017 = vmatprep.subr.mxu1 %v3754_v3  ;;  %593 = vmatpush1.msra.mxu0 %v2743_v15 }
  0x60   :  { %2018 = vmatpush3.msra.mxu1 %v2822_v28  ;;  %594 = vmatprep.subr.mxu0 %v2753_v17 }
  0x61   :  { %2019 = vmatprep.subr.mxu1 %v3754_v3  ;;  %595 = vmatpush1.msra.mxu0 %v2759_v18 }
  0x62   :  { %2020 = vmatpush3.msra.mxu1 %v2831_v29  ;;  %596 = vmatprep.subr.mxu0 %v2766_v19 }
  0x63   :  { %2021 = vmatprep.subr.mxu1 %v3754_v3  ;;  %597 = vmatpush1.msra.mxu0 %v2773_v20 }
  0x64   :  { %2022 = vmatpush3.msra.mxu1 %v2839_v30  ;;  %598 = vmatprep.subr.mxu0 %v2788_v23 }
  0x65   :  { %2023 = vmatprep.subr.mxu1 %v3754_v3  ;;  %599 = vmatpush1.msra.mxu0 %v2794_v24 }
  0x66   :  { %2024 = vmatpush3.msra.mxu1 %v2848_v31  ;;  %600 = vmatprep.subr.mxu0 %v2801_v25 }
  0x67   :  { %2025 = vmatprep.subr.mxu1 %v3754_v3  ;;  %601 = vmatpush1.msra.mxu0 %v2808_v26 }
  0x68   :  { %2026 = vmatpush3.msra.mxu1 %v2857_v32  ;;  %634 = vmatprep.mubr.f32.mxu0 %v3754_v3 }
  0x69   :  { %2027 = vmatprep.subr.mxu1 %v3754_v3  ;;  %2045 = vmatprep.mubr.msk.f32.mxu1 %vm2390_vm0, %v3754_v3 }
  0x6a   :  { %2028 = vmatpush3.msra.mxu1 %v2864_v33  ;;  %738 = vmatprep.subr.mxu0 %v2559_v45 }
  0x6b   :  { %2029 = vmatprep.subr.mxu1 %v3754_v3 }
  0x6c   :  { %2030 = vmatpush3.msra.mxu1 %v2873_v34 }
  0x6d   :  { %2031 = vmatprep.subr.mxu1 %v3754_v3 }
  0x6e   :  { %2032 = vmatpush3.msra.mxu1 %v2882_v35 }
  0x6f   :  { %2033 = vmatprep.subr.mxu1 %v3754_v3 }
  0x70   :  { %2034 = vmatpush3.msra.mxu1 %v2891_v36 }
  0x71   :  { %2035 = vmatprep.subr.mxu1 %v3754_v3 }
  0x72   :  { %2036 = vmatpush3.msra.mxu1 %v2900_v37 }
  0x73   :  { %2037 = vmatprep.subr.mxu1 %v3754_v3 }
  0x74   :  { %2038 = vmatpush3.msra.mxu1 %v2909_v38 }
  0x75   :  { %2039 = vmatprep.subr.mxu1 %v3754_v3 }
  0x76   :  { %2040 = vmatpush3.msra.mxu1 %v2918_v39 }
  0x77   :  { %2041 = vmatprep.subr.mxu1 %v3754_v3 }
  0x78   :  { %2042 = vmatpush3.msra.mxu1 %v2927_v40 }
  0x79   :  { %2043 = vmatprep.subr.mxu1 %v3754_v3 }
  0x7a   :  { %2044 = vmatpush3.msra.mxu1 %v2936_v41 }
  0x7b   :  { %2048 = vmatprep.subr.mxu1 %v3754_v3 }
  0xe2   :  { %v164_v50 = vpop.f32.mrf.mxu0 }
  0xe4   :  { %v166_v56 = vpop.f32.mrf.mxu0 }
  0xe6   :  { %v170_v62 = vpop.f32.mrf.mxu0 }
  0xe7   :  { %v2998_v5 = vadd.f32 %v170_v62, %v86_v60 }
  0xe8   :  { %v172_v9 = vpop.f32.mrf.mxu0 }
  0xe9   :  { %3779 = vst [vmem:[#allocation10_spill] sm:$0xff] %v2998_v5  ;;  %v3000_v11 = vadd.f32 %v172_v9, %v90_v2  ;;  %v93_v9 = vsub.s32 2, %v84_v43 }
  0xea   :  { %v176_v16 = vpop.f32.mrf.mxu0 }
  0xeb   :  { %3780 = vst [vmem:[#allocation11_spill] sm:$0xff] %v3000_v11  ;;  %v3002_v22 = vadd.f32 %v176_v16, %v86_v60 }
  0xec   :  { %v178_v42 = vpop.f32.mrf.mxu0 }
  0xed   :  { %3781 = vst [vmem:[#allocation12_spill] sm:$0xff] %v3002_v22  ;;  %v3004_v3 = vadd.f32 %v178_v42, %v90_v2  ;;  %v94_v42 = vrot.slane %v81_v48, %v93_v9 }
  0xee   :  { %v182_v45 = vpop.f32.mrf.mxu0 }
  0xef   :  { %3782 = vst [vmem:[#allocation13_spill] sm:$0xff] %v3004_v3  ;;  %v3006_v41 = vadd.f32 %v182_v45, %v86_v60 }
  0xf0   :  { %v184_v26 = vpop.f32.mrf.mxu0 }
  0xf1   :  { %3783 = vst [vmem:[#allocation14_spill] sm:$0xff] %v3006_v41  ;;  %v3008_v25 = vadd.f32 %v184_v26, %v90_v2  ;;  %v1968_v26 = vpop.f32.mrf.mxu1 }
  0xf2   :  { %v188_v44 = vpop.f32.mrf.mxu0 }
  0xf3   :  { %3784 = vst [vmem:[#allocation15_spill] sm:$0xff] %v3008_v25  ;;  %v3010_v40 = vadd.f32 %v188_v44, %v86_v60  ;;  %v3022_v44 = vadd.f32 %v1968_v26, %v94_v42 }
  0xf4   :  { %v190_v54 = vpop.f32.mrf.mxu0 }
  0xf5   :  { %3785 = vst [vmem:[#allocation16_spill] sm:$0xff] %v3010_v40  ;;  %v3012_v62 = vadd.f32 %v190_v54, %v90_v2  ;;  %3791 = vst [vmem:[#allocation22_spill] sm:$0xff] %v3022_v44 }
  0xf6   :  { %v194_v11 = vpop.f32.mrf.mxu0 }
  0xf7   :  { %3786 = vst [vmem:[#allocation17_spill] sm:$0xff] %v3012_v62  ;;  %v3014_v5 = vadd.f32 %v194_v11, %v86_v60  ;;  %v165_v62 = vadd.f32 %v164_v50, %v86_v60  ;;  %v167_v50 = vadd.f32 %v166_v56, %v90_v2 }
  0xf8   :  { %v196_v16 = vpop.f32.mrf.mxu0 }
  0xf9   :  { %3787 = vst [vmem:[#allocation18_spill] sm:$0xff] %v3014_v5  ;;  %v3016_v22 = vadd.f32 %v196_v16, %v90_v2  ;;  %v277_v16 = vpop.f32.mrf.mxu1 }
  0xfa   :  { %v200_v3 = vpop.f32.mrf.mxu0 }
  0xfb   :  { %3788 = vst [vmem:[#allocation19_spill] sm:$0xff] %v3016_v22  ;;  %v3018_v45 = vadd.f32 %v200_v3, %v86_v60 }
  0xfc   :  { %v202_v41 = vpop.f32.mrf.mxu0 }
  0xfd   :  { %3789 = vst [vmem:[#allocation20_spill] sm:$0xff] %v3018_v45  ;;  %v3020_v25 = vadd.f32 %v202_v41, %v90_v2 }
  0xfe   :  { %v206_v40 = vpop.f32.mrf.mxu0 }
  0xff   :  { %3790 = vst [vmem:[#allocation21_spill] sm:$0xff] %v3020_v25  ;;  %v3024_v54 = vadd.f32 %v206_v40, %v86_v60 }
 0x100   :  { %v208_v43 = vpop.f32.mrf.mxu0  ;;  %v1971_v48 = vpop.f32.mrf.mxu1 }
 0x101   :  { %3792 = vst [vmem:[#allocation23_spill] sm:$0xff] %v3024_v54  ;;  %v3026_v11 = vadd.f32 %v208_v43, %v90_v2  ;;  %v3028_v3 = vadd.f32 %v1971_v48, %v94_v42 }
 0x102   :  { %v468_v5 = vpop.f32.mrf.mxu0  ;;  %v287_v45 = vpop.f32.mrf.mxu1 }
 0x103   :  { %3793 = vst [vmem:[#allocation24_spill] sm:$0xff] %v3026_v11  ;;  %v543_v22 = vadd.f32 %v468_v5, %v165_v62  ;;  %3794 = vst [vmem:[#allocation25_spill] sm:$0xff] %v3028_v3  ;;  %v3030_v41 = vadd.f32 %v287_v45, %v94_v42  ;;  %v3043_v45 = vld [vmem:[%s3752_s4] ss:$0 sm:$0xff] }
 0x104   :  { %v470_v54 = vpop.f32.mrf.mxu0 }
 0x105   :  { %v1758_v9 = vmul.f32 -1.442695, %v543_v22  ;;  %3795 = vst [vmem:[#allocation26_spill] sm:$0xff] %v3030_v41  ;;  %v1974_v26 = vpop.f32.mrf.mxu1  ;;  %v550_v5 = vadd.f32 %v470_v54, %v167_v50  ;;  %v278_v54 = vadd.f32 %v277_v16, %v94_v42  ;;  %v3801_v16 = vld [vmem:[#allocation8_spill] sm:$0xff] }
 0x106   :  { %v3032_v25 = vadd.f32 %v1974_v26, %v94_v42 }
 0x107   :  { %2260 = vpow2.f32 %v1758_v9  ;;  %v297_v40 = vpop.f32.mrf.mxu1  ;;  %v1759_v48 = vmul.f32 -1.442695, %v550_v5 }
 0x108   :  { %3796 = vst [vmem:[#allocation27_spill] sm:$0xff] %v3032_v25  ;;  %v3034_v44 = vadd.f32 %v297_v40, %v94_v42 }
 0x109   :  { %v1977_v60 = vpop.f32.mrf.mxu1  ;;  %2262 = vpow2.f32 %v1759_v48 }
 0x10a   :  { %3797 = vst [vmem:[#allocation28_spill] sm:$0xff] %v3034_v44  ;;  %v3036_v43 = vadd.f32 %v1977_v60, %v94_v42 }
 0x10b   :  { %v307_v62 = vpop.f32.mrf.mxu1 }
 0x10c   :  { %3798 = vst [vmem:[#allocation29_spill] sm:$0xff] %v3036_v43  ;;  %v3038_v22 = vadd.f32 %v307_v62, %v94_v42  ;;  %v3800_v42 = vmov 0.0  }
 0x10e   :  { %3799 = vst [vmem:[#allocation30_spill] sm:$0xff] %v3038_v22 }
 0x114   :  { %v2261_v11 = vpop.eup %2260 }
 0x115   :  { %v547_v9 = vadd.f32 1.0, %v2261_v11 }
 0x116   :  { %v2263_v2 = vpop.eup %2262 }
 0x117   :  { %2264 = vrcp.f32 %v547_v9  ;;  %v554_v62 = vadd.f32 1.0, %v2263_v2 }
 0x11b   :  { %v539_v26 = vpop.f32.mrf.mxu1 }
 0x11c   :  { %v557_v56 = vadd.f32 %v3043_v45, %v539_v26  ;;  %v3803_v26 = vld [vmem:[#allocation7_spill] sm:$0xff] }
 0x11d   :  { %v2012_v40 = vpop.f32.mrf.mxu1 }
 0x11e   :  { %v3804_v40 = vld [vmem:[#allocation9_spill] sm:$0xff] }
 0x124   :  { %v2265_v60 = vpop.eup %2264 }
 0x125   :  { %v558_v50 = vmul.f32 %v2265_v60, %v557_v56  ;;  %v3805_v56 = vld [vmem:[#allocation4_spill] sm:$0xff] }
 0x127   :  { %v559_v43 = vadd.f32 %v558_v50, %v278_v54  ;;  %v3806_v54 = vld [vmem:[#allocation10_spill] sm:$0xff] }
 0x129   :  { %2266 = vtanh.f32 %v559_v43  ;;  %v3802_v43 = vld [vmem:[#allocation6_spill] sm:$0xff] }
 0x12a   :  { %2268 = vrcp.f32 %v554_v62 }
 0x136   :  { %v2267_v11 = vpop.eup %2266 }
 0x137   :  { %v561_v5 = vsub.f32 0.0, %v2267_v11  ;;  %v2269_v48 = vpop.eup %2268 }
 0x139   :  { %v562_v9 = vmul.f32 %v2269_v48, %v561_v5  ;;  %v3807_v48 = vld [vmem:[#allocation11_spill] sm:$0xff] }
 0x13b   :  { %v3046_v22 = vadd.f32 %v2267_v11, %v562_v9 }
 0x13d   :  { %635 = vmatmul.mubr.f32.vlgmr.msra.gmra.mxu0 %v3046_v22  ;;  %2046 = vmatmul.mubr.f32.vlgmr.msra.gmra.mxu1 %v3046_v22 }
 0x13e   :  { %739 = vmatpush1.msra.mxu0 %v2564_v46  ;;  %2049 = vmatpush3.msra.mxu1 %v2778_v21 }
 0x13f   :  { %740 = vmatprep.subr.mxu0 %v2569_v47  ;;  %2050 = vmatprep.subr.mxu1 %v3800_v42 }
 0x140   :  { %741 = vmatpush1.msra.mxu0 %v2579_v49  ;;  %2051 = vmatpush3.msra.mxu1 %v2813_v27 }
 0x141   :  { %742 = vmatprep.subr.mxu0 %v2591_v51  ;;  %2052 = vmatprep.subr.mxu1 %v3800_v42 }
 0x142   :  { %743 = vmatpush1.msra.mxu0 %v2597_v52  ;;  %2053 = vmatpush3.msra.mxu1 %v2822_v28 }
 0x143   :  { %744 = vmatprep.subr.mxu0 %v2603_v53  ;;  %2054 = vmatprep.subr.mxu1 %v3800_v42 }
 0x144   :  { %745 = vmatpush1.msra.mxu0 %v2613_v55  ;;  %2055 = vmatpush3.msra.mxu1 %v2831_v29 }
 0x145   :  { %746 = vmatprep.subr.mxu0 %v2625_v57  ;;  %2056 = vmatprep.subr.mxu1 %v3800_v42 }
 0x146   :  { %747 = vmatpush1.msra.mxu0 %v2631_v58  ;;  %2057 = vmatpush3.msra.mxu1 %v2839_v30 }
 0x147   :  { %748 = vmatprep.subr.mxu0 %v2637_v59  ;;  %2058 = vmatprep.subr.mxu1 %v3800_v42 }
 0x148   :  { %749 = vmatpush1.msra.mxu0 %v2647_v61  ;;  %2059 = vmatpush3.msra.mxu1 %v2848_v31 }
 0x149   :  { %750 = vmatprep.subr.mxu0 %v2659_v63  ;;  %2060 = vmatprep.subr.mxu1 %v3800_v42 }
 0x14a   :  { %751 = vmatpush1.msra.mxu0 %v2665_v0  ;;  %2061 = vmatpush3.msra.mxu1 %v2857_v32 }
 0x14b   :  { %752 = vmatprep.subr.mxu0 %v2671_v1  ;;  %2062 = vmatprep.subr.mxu1 %v3800_v42 }
 0x14c   :  { %753 = vmatpush1.msra.mxu0 %v2681_v4  ;;  %2063 = vmatpush3.msra.mxu1 %v2864_v33 }
 0x14d   :  { %754 = vmatprep.subr.mxu0 %v2693_v6  ;;  %2064 = vmatprep.subr.mxu1 %v3800_v42 }
 0x14e   :  { %755 = vmatpush1.msra.mxu0 %v2699_v7  ;;  %2065 = vmatpush3.msra.mxu1 %v2873_v34 }
 0x14f   :  { %756 = vmatprep.subr.mxu0 %v2705_v8  ;;  %2066 = vmatprep.subr.mxu1 %v3800_v42 }
 0x150   :  { %757 = vmatpush1.msra.mxu0 %v2715_v10  ;;  %2067 = vmatpush3.msra.mxu1 %v2882_v35 }
 0x151   :  { %758 = vmatprep.subr.mxu0 %v2725_v12  ;;  %2068 = vmatprep.subr.mxu1 %v3800_v42 }
 0x152   :  { %759 = vmatpush1.msra.mxu0 %v2731_v13  ;;  %2069 = vmatpush3.msra.mxu1 %v2891_v36 }
 0x153   :  { %760 = vmatprep.subr.mxu0 %v2737_v14  ;;  %2070 = vmatprep.subr.mxu1 %v3800_v42 }
 0x154   :  { %761 = vmatpush1.msra.mxu0 %v2743_v15  ;;  %2071 = vmatpush3.msra.mxu1 %v2900_v37 }
 0x155   :  { %762 = vmatprep.subr.mxu0 %v2753_v17  ;;  %2072 = vmatprep.subr.mxu1 %v3800_v42 }
 0x156   :  { %763 = vmatpush1.msra.mxu0 %v2759_v18  ;;  %2073 = vmatpush3.msra.mxu1 %v2909_v38 }
 0x157   :  { %764 = vmatprep.subr.mxu0 %v2766_v19  ;;  %2074 = vmatprep.subr.mxu1 %v3800_v42 }
 0x158   :  { %765 = vmatpush1.msra.mxu0 %v2773_v20  ;;  %2075 = vmatpush3.msra.mxu1 %v2918_v39 }
 0x159   :  { %766 = vmatprep.subr.mxu0 %v2788_v23  ;;  %2076 = vmatprep.subr.mxu1 %v3800_v42 }
 0x15a   :  { %767 = vmatpush1.msra.mxu0 %v2794_v24  ;;  %2077 = vmatpush3.msra.mxu1 %v3801_v16 }
 0x15b   :  { %768 = vmatprep.subr.mxu0 %v3802_v43  ;;  %2078 = vmatprep.subr.mxu1 %v3800_v42  ;;  %v3808_v43 = vld [vmem:[#allocation22_spill] sm:$0xff] }
 0x15c   :  { %769 = vmatpush1.msra.mxu0 %v3803_v26  ;;  %802 = vmatprep.mubr.f32.mxu0 %v3800_v42 }
 0x15d   :  { %2079 = vmatpush3.msra.mxu1 %v3804_v40  ;;  %2080 = vmatprep.mubr.msk.f32.mxu1 %vm2390_vm0, %v3800_v42 }
 0x15e   :  { %906 = vmatprep.subr.mxu0 %v3805_v56  ;;  %2083 = vmatprep.subr.mxu1 %v3800_v42 }
 0x1fd   :  { %v636_v2 = vpop.f32.mrf.mxu0  ;;  %v707_v60 = vpop.f32.mrf.mxu1 }
 0x1fe   :  { %v711_v50 = vadd.f32 %v636_v2, %v3806_v54  ;;  %v725_v56 = vadd.f32 %v3043_v45, %v707_v60 }
 0x1ff   :  { %v2047_v62 = vpop.f32.mrf.mxu1  ;;  %v638_v5 = vpop.f32.mrf.mxu0 }
 0x200   :  { %v1760_v11 = vmul.f32 -1.442695, %v711_v50  ;;  %v718_v9 = vadd.f32 %v638_v5, %v3807_v48  ;;  %v3816_v48 = vld [vmem:[#allocation13_spill] sm:$0xff] }
 0x202   :  { %2270 = vpow2.f32 %v1760_v11  ;;  %v1761_v25 = vmul.f32 -1.442695, %v718_v9 }
 0x204   :  { %2272 = vpow2.f32 %v1761_v25  ;;  %v3810_v25 = vld [vmem:[#allocation8_spill] sm:$0xff] }
 0x20f   :  { %v2271_v44 = vpop.eup %2270 }
 0x210   :  { %v715_v3 = vadd.f32 1.0, %v2271_v44  ;;  %v3811_v44 = vld [vmem:[#allocation6_spill] sm:$0xff] }
 0x211   :  { %v2273_v41 = vpop.eup %2272 }
 0x212   :  { %2274 = vrcp.f32 %v715_v3  ;;  %v722_v24 = vadd.f32 1.0, %v2273_v41  ;;  %v3812_v3 = vld [vmem:[#allocation7_spill] sm:$0xff]  ;;  %v3813_v41 = vld [vmem:[#allocation9_spill] sm:$0xff] }
 0x21f   :  { %v2275_v40 = vpop.eup %2274 }
 0x220   :  { %v726_v26 = vmul.f32 %v2275_v40, %v725_v56 }
 0x222   :  { %v727_v16 = vadd.f32 %v726_v26, %v3808_v43  ;;  %v3815_v26 = vld [vmem:[#allocation12_spill] sm:$0xff] }
 0x224   :  { %2276 = vtanh.f32 %v727_v16 }
 0x225   :  { %2278 = vrcp.f32 %v722_v24  ;;  %v3809_v24 = vld [vmem:[#allocation5_spill] sm:$0xff] }
 0x231   :  { %v2277_v2 = vpop.eup %2276 }
 0x232   :  { %v729_v54 = vsub.f32 %v3046_v22, %v2277_v2  ;;  %v2279_v50 = vpop.eup %2278  ;;  %v3814_v22 = vld [vmem:[#allocation4_spill] sm:$0xff] }
 0x234   :  { %v730_v62 = vmul.f32 %v2279_v50, %v729_v54 }
 0x236   :  { %v3122_v11 = vadd.f32 %v2277_v2, %v730_v62 }
 0x238   :  { %803 = vmatmul.mubr.f32.vlgmr.msra.gmra.mxu0 %v3122_v11  ;;  %2081 = vmatmul.mubr.f32.vlgmr.msra.gmra.mxu1 %v3122_v11 }
 0x239   :  { %907 = vmatpush1.msra.mxu0 %v2564_v46  ;;  %2084 = vmatpush3.msra.mxu1 %v2778_v21 }
 0x23a   :  { %908 = vmatprep.subr.mxu0 %v2569_v47  ;;  %2085 = vmatprep.subr.mxu1 %v3800_v42 }
 0x23b   :  { %909 = vmatpush1.msra.mxu0 %v2579_v49  ;;  %2086 = vmatpush3.msra.mxu1 %v2813_v27 }
 0x23c   :  { %910 = vmatprep.subr.mxu0 %v2591_v51  ;;  %2087 = vmatprep.subr.mxu1 %v3800_v42 }
 0x23d   :  { %911 = vmatpush1.msra.mxu0 %v2597_v52  ;;  %2088 = vmatpush3.msra.mxu1 %v2822_v28 }
 0x23e   :  { %912 = vmatprep.subr.mxu0 %v2603_v53  ;;  %2089 = vmatprep.subr.mxu1 %v3800_v42 }
 0x23f   :  { %913 = vmatpush1.msra.mxu0 %v2613_v55  ;;  %2090 = vmatpush3.msra.mxu1 %v2831_v29 }
 0x240   :  { %914 = vmatprep.subr.mxu0 %v2625_v57  ;;  %2091 = vmatprep.subr.mxu1 %v3800_v42 }
 0x241   :  { %915 = vmatpush1.msra.mxu0 %v2631_v58  ;;  %2092 = vmatpush3.msra.mxu1 %v2839_v30 }
 0x242   :  { %916 = vmatprep.subr.mxu0 %v2637_v59  ;;  %2093 = vmatprep.subr.mxu1 %v3800_v42 }
 0x243   :  { %917 = vmatpush1.msra.mxu0 %v2647_v61  ;;  %2094 = vmatpush3.msra.mxu1 %v2848_v31 }
 0x244   :  { %918 = vmatprep.subr.mxu0 %v2659_v63  ;;  %2095 = vmatprep.subr.mxu1 %v3800_v42 }
 0x245   :  { %919 = vmatpush1.msra.mxu0 %v2665_v0  ;;  %2096 = vmatpush3.msra.mxu1 %v2857_v32 }
 0x246   :  { %920 = vmatprep.subr.mxu0 %v2671_v1  ;;  %2097 = vmatprep.subr.mxu1 %v3800_v42 }
 0x247   :  { %921 = vmatpush1.msra.mxu0 %v2681_v4  ;;  %2098 = vmatpush3.msra.mxu1 %v2864_v33 }
 0x248   :  { %922 = vmatprep.subr.mxu0 %v2693_v6  ;;  %2099 = vmatprep.subr.mxu1 %v3800_v42 }
 0x249   :  { %923 = vmatpush1.msra.mxu0 %v2699_v7  ;;  %2100 = vmatpush3.msra.mxu1 %v2873_v34 }
 0x24a   :  { %924 = vmatprep.subr.mxu0 %v2705_v8  ;;  %2101 = vmatprep.subr.mxu1 %v3800_v42 }
 0x24b   :  { %925 = vmatpush1.msra.mxu0 %v2715_v10  ;;  %2102 = vmatpush3.msra.mxu1 %v2882_v35 }
 0x24c   :  { %926 = vmatprep.subr.mxu0 %v2725_v12  ;;  %2103 = vmatprep.subr.mxu1 %v3800_v42 }
 0x24d   :  { %927 = vmatpush1.msra.mxu0 %v2731_v13  ;;  %2104 = vmatpush3.msra.mxu1 %v2891_v36 }
 0x24e   :  { %928 = vmatprep.subr.mxu0 %v2737_v14  ;;  %2105 = vmatprep.subr.mxu1 %v3800_v42 }
 0x24f   :  { %929 = vmatpush1.msra.mxu0 %v2743_v15  ;;  %2106 = vmatpush3.msra.mxu1 %v2900_v37 }
 0x250   :  { %930 = vmatprep.subr.mxu0 %v2753_v17  ;;  %2107 = vmatprep.subr.mxu1 %v3800_v42 }
 0x251   :  { %931 = vmatpush1.msra.mxu0 %v2759_v18  ;;  %2108 = vmatpush3.msra.mxu1 %v2909_v38 }
 0x252   :  { %932 = vmatprep.subr.mxu0 %v2766_v19  ;;  %2109 = vmatprep.subr.mxu1 %v3800_v42 }
 0x253   :  { %933 = vmatpush1.msra.mxu0 %v2773_v20  ;;  %2110 = vmatpush3.msra.mxu1 %v2918_v39 }
 0x254   :  { %934 = vmatprep.subr.mxu0 %v2788_v23  ;;  %2111 = vmatprep.subr.mxu1 %v3800_v42 }
 0x255   :  { %935 = vmatpush1.msra.mxu0 %v3809_v24  ;;  %2112 = vmatpush3.msra.mxu1 %v3810_v25 }
 0x256   :  { %936 = vmatprep.subr.mxu0 %v3811_v44  ;;  %2113 = vmatprep.subr.mxu1 %v3800_v42  ;;  %v3817_v44 = vld [vmem:[#allocation26_spill] sm:$0xff] }
 0x257   :  { %937 = vmatpush1.msra.mxu0 %v3812_v3  ;;  %970 = vmatprep.mubr.f32.mxu0 %v3800_v42 }
 0x258   :  { %2114 = vmatpush3.msra.mxu1 %v3813_v41  ;;  %2115 = vmatprep.mubr.msk.f32.mxu1 %vm2390_vm0, %v3800_v42 }
 0x259   :  { %1074 = vmatprep.subr.mxu0 %v3814_v22  ;;  %2118 = vmatprep.subr.mxu1 %v3800_v42 }
 0x2f8   :  { %v804_v16 = vpop.f32.mrf.mxu0  ;;  %v875_v43 = vpop.f32.mrf.mxu1 }
 0x2f9   :  { %v879_v40 = vadd.f32 %v804_v16, %v3815_v26  ;;  %v893_v22 = vadd.f32 %v3043_v45, %v875_v43  ;;  %v3319_v43 = vld [vmem:[%s3750_s2 + $0x138] sm:$0xff] }
 0x2fa   :  { %v2082_v56 = vpop.f32.mrf.mxu1  ;;  %v806_v5 = vpop.f32.mrf.mxu0 }
 0x2fb   :  { %v1762_v60 = vmul.f32 -1.442695, %v879_v40  ;;  %v886_v9 = vadd.f32 %v806_v5, %v3816_v48  ;;  %v3333_v5 = vld [vmem:[%s3750_s2 + $0x120] sm:$0xff]  ;;  %v3347_v48 = vld [vmem:[%s3750_s2 + $0x108] sm:$0xff] }
 0x2fd   :  { %2280 = vpow2.f32 %v1762_v60  ;;  %v1763_v2 = vmul.f32 -1.442695, %v886_v9  ;;  %v3361_v9 = vld [vmem:[%s3750_s2 + $0xf0] sm:$0xff] }
 0x2ff   :  { %2282 = vpow2.f32 %v1763_v2  ;;  %v3375_v2 = vld [vmem:[%s3750_s2 + $0xd8] sm:$0xff] }
 0x30a   :  { %v2281_v54 = vpop.eup %2280 }
 0x30b   :  { %v883_v50 = vadd.f32 1.0, %v2281_v54  ;;  %v3389_v54 = vld [vmem:[%s3750_s2 + $0xc0] sm:$0xff] }
 0x30c   :  { %v2283_v62 = vpop.eup %2282 }
 0x30d   :  { %2284 = vrcp.f32 %v883_v50  ;;  %v890_v24 = vadd.f32 1.0, %v2283_v62  ;;  %v3403_v50 = vld [vmem:[%s3750_s2 + $0xa8] sm:$0xff]  ;;  %v3417_v62 = vld [vmem:[%s3750_s2 + $0x90] sm:$0xff] }
 0x31a   :  { %v2285_v41 = vpop.eup %2284 }
 0x31b   :  { %v894_v3 = vmul.f32 %v2285_v41, %v893_v22  ;;  %v3312_v41 = vld [vmem:[%s3750_s2 + $0x140] sm:$0xff]  ;;  %v3431_v22 = vld [vmem:[%s3750_s2 + $0x78] sm:$0xff] }
 0x31d   :  { %v895_v25 = vadd.f32 %v894_v3, %v3817_v44  ;;  %v3298_v44 = vld [vmem:[%s3750_s2 + $0x158] sm:$0xff]  ;;  %v3305_v3 = vld [vmem:[%s3750_s2 + $0x150] sm:$0xff] }
 0x31f   :  { %2286 = vtanh.f32 %v895_v25  ;;  %v3292_v25 = vld [vmem:[%s3750_s2 + $0x178] sm:$0xff] }
 0x320   :  { %2288 = vrcp.f32 %v890_v24  ;;  %v3286_v24 = vld [vmem:[%s3750_s2 + $0x168] sm:$0xff] }
 0x32c   :  { %v2287_v16 = vpop.eup %2286 }
 0x32d   :  { %v897_v26 = vsub.f32 %v3122_v11, %v2287_v16  ;;  %v2289_v40 = vpop.eup %2288 }
 0x32f   :  { %v898_v56 = vmul.f32 %v2289_v40, %v897_v26  ;;  %v3459_v26 = vld [vmem:[%s3750_s2 + $0x48] sm:$0xff]  ;;  %v3473_v40 = vld [vmem:[%s3750_s2 + $0x30] sm:$0xff] }
 0x331   :  { %v3198_v60 = vadd.f32 %v2287_v16, %v898_v56  ;;  %v3445_v16 = vld [vmem:[%s3750_s2 + $0x60] sm:$0xff]  ;;  %v3487_v56 = vld [vmem:[%s3750_s2 + $0x18] sm:$0xff] }
 0x332   :  { %3826 = vst [vmem:[#allocation10_spill] sm:$0xff] %v3487_v56 }
 0x333   :  { %971 = vmatmul.mubr.f32.vlgmr.msra.gmra.mxu0 %v3198_v60  ;;  %2116 = vmatmul.mubr.f32.vlgmr.msra.gmra.mxu1 %v3198_v60 }
 0x334   :  { %1075 = vmatpush1.msra.mxu0 %v2564_v46  ;;  %2119 = vmatpush3.msra.mxu1 %v2778_v21  ;;  %v3818_v46 = vld [vmem:[#allocation5_spill] sm:$0xff] }
 0x335   :  { %1076 = vmatprep.subr.mxu0 %v2569_v47  ;;  %2120 = vmatprep.subr.mxu1 %v3800_v42  ;;  %v3819_v47 = vld [vmem:[#allocation8_spill] sm:$0xff] }
 0x336   :  { %1077 = vmatpush1.msra.mxu0 %v2579_v49  ;;  %2121 = vmatpush3.msra.mxu1 %v2813_v27  ;;  %v3820_v49 = vld [vmem:[#allocation6_spill] sm:$0xff] }
 0x337   :  { %1078 = vmatprep.subr.mxu0 %v2591_v51  ;;  %2122 = vmatprep.subr.mxu1 %v3800_v42  ;;  %v3821_v51 = vld [vmem:[#allocation7_spill] sm:$0xff] }
 0x338   :  { %1079 = vmatpush1.msra.mxu0 %v2597_v52  ;;  %2123 = vmatpush3.msra.mxu1 %v2822_v28  ;;  %v3822_v52 = vld [vmem:[#allocation9_spill] sm:$0xff] }
 0x339   :  { %1080 = vmatprep.subr.mxu0 %v2603_v53  ;;  %2124 = vmatprep.subr.mxu1 %v3800_v42  ;;  %v3270_v53 = vld [vmem:[%s3750_s2 + $0x170] sm:$0xff] }
 0x33a   :  { %1081 = vmatpush1.msra.mxu0 %v2613_v55  ;;  %2125 = vmatpush3.msra.mxu1 %v2831_v29 }
 0x33b   :  { %1082 = vmatprep.subr.mxu0 %v2625_v57  ;;  %2126 = vmatprep.subr.mxu1 %v3800_v42 }
 0x33c   :  { %1083 = vmatpush1.msra.mxu0 %v2631_v58  ;;  %2127 = vmatpush3.msra.mxu1 %v2839_v30  ;;  %v3823_v58 = vld [vmem:[#allocation14_spill] sm:$0xff] }
 0x33d   :  { %1084 = vmatprep.subr.mxu0 %v2637_v59  ;;  %2128 = vmatprep.subr.mxu1 %v3800_v42 }
 0x33e   :  { %1085 = vmatpush1.msra.mxu0 %v2647_v61  ;;  %2129 = vmatpush3.msra.mxu1 %v2848_v31 }
 0x33f   :  { %1086 = vmatprep.subr.mxu0 %v2659_v63  ;;  %2130 = vmatprep.subr.mxu1 %v3800_v42 }
 0x340   :  { %1087 = vmatpush1.msra.mxu0 %v2665_v0  ;;  %2131 = vmatpush3.msra.mxu1 %v2857_v32 }
 0x341   :  { %1088 = vmatprep.subr.mxu0 %v2671_v1  ;;  %2132 = vmatprep.subr.mxu1 %v3800_v42  ;;  %v3824_v1 = vld [vmem:[#allocation15_spill] sm:$0xff] }
 0x342   :  { %1089 = vmatpush1.msra.mxu0 %v2681_v4  ;;  %2133 = vmatpush3.msra.mxu1 %v2864_v33 }
 0x343   :  { %1090 = vmatprep.subr.mxu0 %v2693_v6  ;;  %2134 = vmatprep.subr.mxu1 %v3800_v42 }
 0x344   :  { %1091 = vmatpush1.msra.mxu0 %v2699_v7  ;;  %2135 = vmatpush3.msra.mxu1 %v2873_v34 }
 0x345   :  { %1092 = vmatprep.subr.mxu0 %v2705_v8  ;;  %2136 = vmatprep.subr.mxu1 %v3800_v42 }
 0x346   :  { %1093 = vmatpush1.msra.mxu0 %v2715_v10  ;;  %2137 = vmatpush3.msra.mxu1 %v2882_v35 }
 0x347   :  { %1094 = vmatprep.subr.mxu0 %v2725_v12  ;;  %2138 = vmatprep.subr.mxu1 %v3800_v42 }
 0x348   :  { %1095 = vmatpush1.msra.mxu0 %v2731_v13  ;;  %2139 = vmatpush3.msra.mxu1 %v2891_v36 }
 0x349   :  { %1096 = vmatprep.subr.mxu0 %v2737_v14  ;;  %2140 = vmatprep.subr.mxu1 %v3800_v42 }
 0x34a   :  { %1097 = vmatpush1.msra.mxu0 %v2743_v15  ;;  %2141 = vmatpush3.msra.mxu1 %v2900_v37  ;;  %v3825_v15 = vld [vmem:[#allocation25_spill] sm:$0xff] }
 0x34b   :  { %1098 = vmatprep.subr.mxu0 %v2753_v17  ;;  %2142 = vmatprep.subr.mxu1 %v3800_v42 }
 0x34c   :  { %1099 = vmatpush1.msra.mxu0 %v2759_v18  ;;  %2143 = vmatpush3.msra.mxu1 %v2909_v38 }
 0x34d   :  { %1100 = vmatprep.subr.mxu0 %v2766_v19  ;;  %2144 = vmatprep.subr.mxu1 %v3800_v42 }
 0x34e   :  { %1101 = vmatpush1.msra.mxu0 %v2773_v20  ;;  %2145 = vmatpush3.msra.mxu1 %v2918_v39 }
 0x34f   :  { %1102 = vmatprep.subr.mxu0 %v2788_v23  ;;  %2146 = vmatprep.subr.mxu1 %v3800_v42 }
 0x350   :  { %1103 = vmatpush1.msra.mxu0 %v3818_v46  ;;  %2147 = vmatpush3.msra.mxu1 %v3819_v47 }
 0x351   :  { %1104 = vmatprep.subr.mxu0 %v3820_v49  ;;  %2148 = vmatprep.subr.mxu1 %v3800_v42  ;;  %v3829_v49 = vld [vmem:[#allocation16_spill] sm:$0xff] }
 0x352   :  { %1105 = vmatpush1.msra.mxu0 %v3821_v51  ;;  %1138 = vmatprep.mubr.f32.mxu0 %v3800_v42 }
 0x353   :  { %2149 = vmatpush3.msra.mxu1 %v3822_v52  ;;  %2150 = vmatprep.mubr.msk.f32.mxu1 %vm2390_vm0, %v3800_v42 }
 0x354   :  { %1242 = vmatprep.subr.mxu0 %v3270_v53  ;;  %2153 = vmatprep.subr.mxu1 %v3800_v42 }
 0x3f3   :  { %v972_v55 = vpop.f32.mrf.mxu0  ;;  %v1043_v57 = vpop.f32.mrf.mxu1 }
 0x3f4   :  { %v1047_v59 = vadd.f32 %v972_v55, %v3823_v58  ;;  %v1061_v12 = vadd.f32 %v3043_v45, %v1043_v57 }
 0x3f5   :  { %v2117_v61 = vpop.f32.mrf.mxu1  ;;  %v974_v0 = vpop.f32.mrf.mxu0 }
 0x3f6   :  { %v1764_v63 = vmul.f32 -1.442695, %v1047_v59  ;;  %v1054_v4 = vadd.f32 %v974_v0, %v3824_v1  ;;  %v3830_v59 = vld [vmem:[#allocation17_spill] sm:$0xff] }
 0x3f8   :  { %2290 = vpow2.f32 %v1764_v63  ;;  %v1765_v6 = vmul.f32 -1.442695, %v1054_v4 }
 0x3fa   :  { %2292 = vpow2.f32 %v1765_v6 }
 0x405   :  { %v2291_v7 = vpop.eup %2290 }
 0x406   :  { %v1051_v8 = vadd.f32 1.0, %v2291_v7 }
 0x407   :  { %v2293_v10 = vpop.eup %2292 }
 0x408   :  { %2294 = vrcp.f32 %v1051_v8  ;;  %v1058_v18 = vadd.f32 1.0, %v2293_v10  ;;  %v3831_v8 = vld [vmem:[#allocation28_spill] sm:$0xff] }
 0x415   :  { %v2295_v13 = vpop.eup %2294 }
 0x416   :  { %v1062_v14 = vmul.f32 %v2295_v13, %v1061_v12 }
 0x418   :  { %v1063_v17 = vadd.f32 %v1062_v14, %v3825_v15 }
 0x41a   :  { %2296 = vtanh.f32 %v1063_v17 }
 0x41b   :  { %2298 = vrcp.f32 %v1058_v18 }
 0x427   :  { %v2297_v19 = vpop.eup %2296 }
 0x428   :  { %v1065_v20 = vsub.f32 %v3198_v60, %v2297_v19  ;;  %v2299_v21 = vpop.eup %2298  ;;  %v3501_v60 = vld [vmem:[%s3750_s2] sm:$0xff] }
 0x429   :  { %3828 = vst [vmem:[#allocation22_spill] sm:$0xff] %v3501_v60 }
 0x42a   :  { %v1066_v23 = vmul.f32 %v2299_v21, %v1065_v20  ;;  %v3536_v20 = vld [vmem:[%s3750_s2 + $0x148] sm:$0xff]  ;;  %v3545_v21 = vld [vmem:[%s3750_s2 + $0x130] sm:$0xff] }
 0x42c   :  { %v3279_v11 = vadd.f32 %v2297_v19, %v1066_v23  ;;  %v3527_v19 = vld [vmem:[%s3750_s2 + $0x160] sm:$0xff]  ;;  %v3554_v23 = vld [vmem:[%s3750_s2 + $0x118] sm:$0xff] }
 0x42e   :  { %1139 = vmatmul.mubr.f32.vlgmr.msra.gmra.mxu0 %v3279_v11  ;;  %2151 = vmatmul.mubr.f32.vlgmr.msra.gmra.mxu1 %v3279_v11 }
 0x42f   :  { %1243 = vmatpush1.msra.mxu0 %v3286_v24  ;;  %2154 = vmatpush3.msra.mxu1 %v3292_v25 }
 0x430   :  { %1244 = vmatprep.subr.mxu0 %v3298_v44  ;;  %2155 = vmatprep.subr.mxu1 %v3800_v42 }
 0x431   :  { %1245 = vmatpush1.msra.mxu0 %v3305_v3  ;;  %2156 = vmatpush3.msra.mxu1 %v2813_v27  ;;  %v3326_v27 = vld [vmem:[%s3750_s2 + $0x128] sm:$0xff] }
 0x432   :  { %1246 = vmatprep.subr.mxu0 %v3312_v41  ;;  %2157 = vmatprep.subr.mxu1 %v3800_v42 }
 0x433   :  { %1247 = vmatpush1.msra.mxu0 %v3319_v43  ;;  %2158 = vmatpush3.msra.mxu1 %v2822_v28  ;;  %v3340_v28 = vld [vmem:[%s3750_s2 + $0x110] sm:$0xff] }
 0x434   :  { %1248 = vmatprep.subr.mxu0 %v3326_v27  ;;  %2159 = vmatprep.subr.mxu1 %v3800_v42 }
 0x435   :  { %1249 = vmatpush1.msra.mxu0 %v3333_v5  ;;  %2160 = vmatpush3.msra.mxu1 %v2831_v29  ;;  %v3354_v29 = vld [vmem:[%s3750_s2 + $0xf8] sm:$0xff] }
 0x436   :  { %1250 = vmatprep.subr.mxu0 %v3340_v28  ;;  %2161 = vmatprep.subr.mxu1 %v3800_v42 }
 0x437   :  { %1251 = vmatpush1.msra.mxu0 %v3347_v48  ;;  %2162 = vmatpush3.msra.mxu1 %v2839_v30  ;;  %v3368_v30 = vld [vmem:[%s3750_s2 + $0xe0] sm:$0xff] }
 0x438   :  { %1252 = vmatprep.subr.mxu0 %v3354_v29  ;;  %2163 = vmatprep.subr.mxu1 %v3800_v42 }
 0x439   :  { %1253 = vmatpush1.msra.mxu0 %v3361_v9  ;;  %2164 = vmatpush3.msra.mxu1 %v2848_v31  ;;  %v3382_v31 = vld [vmem:[%s3750_s2 + $0xc8] sm:$0xff] }
 0x43a   :  { %1254 = vmatprep.subr.mxu0 %v3368_v30  ;;  %2165 = vmatprep.subr.mxu1 %v3800_v42 }
 0x43b   :  { %1255 = vmatpush1.msra.mxu0 %v3375_v2  ;;  %2166 = vmatpush3.msra.mxu1 %v2857_v32  ;;  %v3396_v32 = vld [vmem:[%s3750_s2 + $0xb0] sm:$0xff] }
 0x43c   :  { %1256 = vmatprep.subr.mxu0 %v3382_v31  ;;  %2167 = vmatprep.subr.mxu1 %v3800_v42 }
 0x43d   :  { %1257 = vmatpush1.msra.mxu0 %v3389_v54  ;;  %2168 = vmatpush3.msra.mxu1 %v2864_v33  ;;  %v3410_v33 = vld [vmem:[%s3750_s2 + $0x98] sm:$0xff] }
 0x43e   :  { %1258 = vmatprep.subr.mxu0 %v3396_v32  ;;  %2169 = vmatprep.subr.mxu1 %v3800_v42 }
 0x43f   :  { %1259 = vmatpush1.msra.mxu0 %v3403_v50  ;;  %2170 = vmatpush3.msra.mxu1 %v2873_v34  ;;  %v3424_v34 = vld [vmem:[%s3750_s2 + $0x80] sm:$0xff] }
 0x440   :  { %1260 = vmatprep.subr.mxu0 %v3410_v33  ;;  %2171 = vmatprep.subr.mxu1 %v3800_v42 }
 0x441   :  { %1261 = vmatpush1.msra.mxu0 %v3417_v62  ;;  %2172 = vmatpush3.msra.mxu1 %v2882_v35  ;;  %v3438_v35 = vld [vmem:[%s3750_s2 + $0x68] sm:$0xff] }
 0x442   :  { %1262 = vmatprep.subr.mxu0 %v3424_v34  ;;  %2173 = vmatprep.subr.mxu1 %v3800_v42 }
 0x443   :  { %1263 = vmatpush1.msra.mxu0 %v3431_v22  ;;  %2174 = vmatpush3.msra.mxu1 %v2891_v36  ;;  %v3452_v36 = vld [vmem:[%s3750_s2 + $0x50] sm:$0xff] }
 0x444   :  { %1264 = vmatprep.subr.mxu0 %v3438_v35  ;;  %2175 = vmatprep.subr.mxu1 %v3800_v42 }
 0x445   :  { %1265 = vmatpush1.msra.mxu0 %v3445_v16  ;;  %2176 = vmatpush3.msra.mxu1 %v2900_v37  ;;  %v3466_v37 = vld [vmem:[%s3750_s2 + $0x38] sm:$0xff] }
 0x446   :  { %1266 = vmatprep.subr.mxu0 %v3452_v36  ;;  %2177 = vmatprep.subr.mxu1 %v3800_v42 }
 0x447   :  { %1267 = vmatpush1.msra.mxu0 %v3459_v26  ;;  %2178 = vmatpush3.msra.mxu1 %v2909_v38  ;;  %v3480_v38 = vld [vmem:[%s3750_s2 + $0x20] sm:$0xff] }
 0x448   :  { %1268 = vmatprep.subr.mxu0 %v3466_v37  ;;  %2179 = vmatprep.subr.mxu1 %v3800_v42 }
 0x449   :  { %1269 = vmatpush1.msra.mxu0 %v3473_v40  ;;  %2180 = vmatpush3.msra.mxu1 %v2918_v39  ;;  %v3494_v39 = vld [vmem:[%s3750_s2 + $0x8] sm:$0xff] }
 0x44a   :  { %1270 = vmatprep.subr.mxu0 %v3480_v38  ;;  %2181 = vmatprep.subr.mxu1 %v3800_v42  ;;  %3827 = vst [vmem:[#allocation11_spill] sm:$0xff] %v3494_v39 }
 0x44b   :  { %1271 = vmatpush1.msra.mxu0 %v3487_v56  ;;  %2182 = vmatpush3.msra.mxu1 %v3819_v47 }
 0x44c   :  { %1272 = vmatprep.subr.mxu0 %v3494_v39  ;;  %2183 = vmatprep.subr.mxu1 %v3800_v42 }
 0x44d   :  { %1273 = vmatpush1.msra.mxu0 %v3501_v60  ;;  %1306 = vmatprep.mubr.f32.mxu0 %v3800_v42 }
 0x44e   :  { %2184 = vmatpush3.msra.mxu1 %v3822_v52  ;;  %2185 = vmatprep.mubr.msk.f32.mxu1 %vm2390_vm0, %v3800_v42 }
 0x44f   :  { %1410 = vmatprep.subr.mxu0 %v3270_v53  ;;  %2188 = vmatprep.subr.mxu1 %v3800_v42 }
 0x4ee   :  { %v1140_v46 = vpop.f32.mrf.mxu0  ;;  %v1211_v47 = vpop.f32.mrf.mxu1 }
 0x4ef   :  { %v1215_v51 = vadd.f32 %v1140_v46, %v3829_v49  ;;  %v1229_v4 = vadd.f32 %v3043_v45, %v1211_v47  ;;  %v3572_v46 = vld [vmem:[%s3750_s2 + $0xe8] sm:$0xff]  ;;  %v3581_v47 = vld [vmem:[%s3750_s2 + $0xd0] sm:$0xff]  ;;  %v3590_v49 = vld [vmem:[%s3750_s2 + $0xb8] sm:$0xff] }
 0x4f0   :  { %v2152_v55 = vpop.f32.mrf.mxu1  ;;  %v1142_v58 = vpop.f32.mrf.mxu0 }
 0x4f1   :  { %v1766_v57 = vmul.f32 -1.442695, %v1215_v51  ;;  %v1222_v61 = vadd.f32 %v1142_v58, %v3830_v59  ;;  %v3599_v51 = vld [vmem:[%s3750_s2 + $0xa0] sm:$0xff]  ;;  %v3608_v55 = vld [vmem:[%s3750_s2 + $0x88] sm:$0xff]  ;;  %v3626_v58 = vld [vmem:[%s3750_s2 + $0x58] sm:$0xff] }
 0x4f2   :  { %v3635_v59 = vld [vmem:[%s3750_s2 + $0x40] sm:$0xff] }
 0x4f3   :  { %2300 = vpow2.f32 %v1766_v57  ;;  %v1767_v63 = vmul.f32 -1.442695, %v1222_v61  ;;  %v3617_v57 = vld [vmem:[%s3750_s2 + $0x70] sm:$0xff]  ;;  %v3644_v61 = vld [vmem:[%s3750_s2 + $0x28] sm:$0xff] }
 0x4f4   :  { %3832 = vst [vmem:[#allocation4_spill] sm:$0xff] %v3644_v61 }
 0x4f5   :  { %2302 = vpow2.f32 %v1767_v63  ;;  %v3654_v63 = vld [vmem:[%s3750_s2 + $0x10] sm:$0xff] }
 0x4f6   :  { %3833 = vst [vmem:[#allocation12_spill] sm:$0xff] %v3654_v63 }
 0x500   :  { %v2301_v0 = vpop.eup %2300 }
 0x501   :  { %v1219_v52 = vadd.f32 1.0, %v2301_v0 }
 0x502   :  { %v2303_v1 = vpop.eup %2302 }
 0x503   :  { %2304 = vrcp.f32 %v1219_v52  ;;  %v1226_v12 = vadd.f32 1.0, %v2303_v1  ;;  %v3834_v1 = vld [vmem:[#allocation18_spill] sm:$0xff] }
 0x510   :  { %v2305_v6 = vpop.eup %2304 }
 0x511   :  { %v1230_v7 = vmul.f32 %v2305_v6, %v1229_v4 }
 0x513   :  { %v1231_v10 = vadd.f32 %v1230_v7, %v3831_v8 }
 0x515   :  { %2306 = vtanh.f32 %v1231_v10  ;;  %v3835_v10 = vld [vmem:[#allocation19_spill] sm:$0xff] }
 0x516   :  { %2308 = vrcp.f32 %v1226_v12 }
 0x522   :  { %v2307_v13 = vpop.eup %2306 }
 0x523   :  { %v1233_v14 = vsub.f32 %v3279_v11, %v2307_v13  ;;  %v2309_v15 = vpop.eup %2308  ;;  %v3563_v11 = vld [vmem:[%s3750_s2 + $0x100] sm:$0xff] }
 0x525   :  { %v1234_v17 = vmul.f32 %v2309_v15, %v1233_v14 }
 0x527   :  { %v3515_v18 = vadd.f32 %v2307_v13, %v1234_v17 }
 0x529   :  { %1307 = vmatmul.mubr.f32.vlgmr.msra.gmra.mxu0 %v3515_v18  ;;  %2186 = vmatmul.mubr.f32.vlgmr.msra.gmra.mxu1 %v3515_v18 }
 0x52a   :  { %1411 = vmatpush1.msra.mxu0 %v3286_v24  ;;  %2189 = vmatpush3.msra.mxu1 %v3292_v25 }
 0x52b   :  { %1412 = vmatprep.subr.mxu0 %v3298_v44  ;;  %2190 = vmatprep.subr.mxu1 %v3800_v42 }
 0x52c   :  { %1413 = vmatpush1.msra.mxu0 %v3305_v3  ;;  %2191 = vmatpush3.msra.mxu1 %v3527_v19 }
 0x52d   :  { %1414 = vmatprep.subr.mxu0 %v3312_v41  ;;  %2192 = vmatprep.subr.mxu1 %v3800_v42 }
 0x52e   :  { %1415 = vmatpush1.msra.mxu0 %v3319_v43  ;;  %2193 = vmatpush3.msra.mxu1 %v3536_v20 }
 0x52f   :  { %1416 = vmatprep.subr.mxu0 %v3326_v27  ;;  %2194 = vmatprep.subr.mxu1 %v3800_v42 }
 0x530   :  { %1417 = vmatpush1.msra.mxu0 %v3333_v5  ;;  %2195 = vmatpush3.msra.mxu1 %v3545_v21 }
 0x531   :  { %1418 = vmatprep.subr.mxu0 %v3340_v28  ;;  %2196 = vmatprep.subr.mxu1 %v3800_v42 }
 0x532   :  { %1419 = vmatpush1.msra.mxu0 %v3347_v48  ;;  %2197 = vmatpush3.msra.mxu1 %v3554_v23 }
 0x533   :  { %1420 = vmatprep.subr.mxu0 %v3354_v29  ;;  %2198 = vmatprep.subr.mxu1 %v3800_v42 }
 0x534   :  { %1421 = vmatpush1.msra.mxu0 %v3361_v9  ;;  %2199 = vmatpush3.msra.mxu1 %v3563_v11 }
 0x535   :  { %1422 = vmatprep.subr.mxu0 %v3368_v30  ;;  %2200 = vmatprep.subr.mxu1 %v3800_v42 }
 0x536   :  { %1423 = vmatpush1.msra.mxu0 %v3375_v2  ;;  %2201 = vmatpush3.msra.mxu1 %v3572_v46 }
 0x537   :  { %1424 = vmatprep.subr.mxu0 %v3382_v31  ;;  %2202 = vmatprep.subr.mxu1 %v3800_v42 }
 0x538   :  { %1425 = vmatpush1.msra.mxu0 %v3389_v54  ;;  %2203 = vmatpush3.msra.mxu1 %v3581_v47 }
 0x539   :  { %1426 = vmatprep.subr.mxu0 %v3396_v32  ;;  %2204 = vmatprep.subr.mxu1 %v3800_v42 }
 0x53a   :  { %1427 = vmatpush1.msra.mxu0 %v3403_v50  ;;  %2205 = vmatpush3.msra.mxu1 %v3590_v49 }
 0x53b   :  { %1428 = vmatprep.subr.mxu0 %v3410_v33  ;;  %2206 = vmatprep.subr.mxu1 %v3800_v42 }
 0x53c   :  { %1429 = vmatpush1.msra.mxu0 %v3417_v62  ;;  %2207 = vmatpush3.msra.mxu1 %v3599_v51 }
 0x53d   :  { %1430 = vmatprep.subr.mxu0 %v3424_v34  ;;  %2208 = vmatprep.subr.mxu1 %v3800_v42 }
 0x53e   :  { %1431 = vmatpush1.msra.mxu0 %v3431_v22  ;;  %2209 = vmatpush3.msra.mxu1 %v3608_v55 }
 0x53f   :  { %1432 = vmatprep.subr.mxu0 %v3438_v35  ;;  %2210 = vmatprep.subr.mxu1 %v3800_v42 }
 0x540   :  { %1433 = vmatpush1.msra.mxu0 %v3445_v16  ;;  %2211 = vmatpush3.msra.mxu1 %v3617_v57 }
 0x541   :  { %1434 = vmatprep.subr.mxu0 %v3452_v36  ;;  %2212 = vmatprep.subr.mxu1 %v3800_v42 }
 0x542   :  { %1435 = vmatpush1.msra.mxu0 %v3459_v26  ;;  %2213 = vmatpush3.msra.mxu1 %v3626_v58 }
 0x543   :  { %1436 = vmatprep.subr.mxu0 %v3466_v37  ;;  %2214 = vmatprep.subr.mxu1 %v3800_v42 }
 0x544   :  { %1437 = vmatpush1.msra.mxu0 %v3473_v40  ;;  %2215 = vmatpush3.msra.mxu1 %v3635_v59 }
 0x545   :  { %1438 = vmatprep.subr.mxu0 %v3480_v38  ;;  %2216 = vmatprep.subr.mxu1 %v3800_v42 }
 0x546   :  { %1439 = vmatpush1.msra.mxu0 %v3487_v56  ;;  %2217 = vmatpush3.msra.mxu1 %v3644_v61 }
 0x547   :  { %1440 = vmatprep.subr.mxu0 %v3494_v39  ;;  %2218 = vmatprep.subr.mxu1 %v3800_v42  ;;  %v3836_v39 = vld [vmem:[#allocation27_spill] sm:$0xff] }
 0x548   :  { %1441 = vmatpush1.msra.mxu0 %v3501_v60  ;;  %1474 = vmatprep.mubr.f32.mxu0 %v3800_v42 }
 0x549   :  { %2219 = vmatpush3.msra.mxu1 %v3654_v63  ;;  %2220 = vmatprep.mubr.msk.f32.mxu1 %vm2390_vm0, %v3800_v42 }
 0x54a   :  { %1578 = vmatprep.subr.mxu0 %v3270_v53  ;;  %2223 = vmatprep.subr.mxu1 %v3800_v42 }
 0x5e9   :  { %v1308_v0 = vpop.f32.mrf.mxu0  ;;  %v1379_v52 = vpop.f32.mrf.mxu1 }
 0x5ea   :  { %v1383_v4 = vadd.f32 %v1308_v0, %v3834_v1  ;;  %v1397_v53 = vadd.f32 %v3043_v45, %v1379_v52  ;;  %v3837_v45 = vld [vmem:[#allocation10_spill] sm:$0xff] }
 0x5eb   :  { %v2187_v6 = vpop.f32.mrf.mxu1  ;;  %v1310_v8 = vpop.f32.mrf.mxu0 }
 0x5ec   :  { %v1768_v7 = vmul.f32 -1.442695, %v1383_v4  ;;  %v1390_v12 = vadd.f32 %v1310_v8, %v3835_v10 }
 0x5ee   :  { %2310 = vpow2.f32 %v1768_v7  ;;  %v1769_v13 = vmul.f32 -1.442695, %v1390_v12 }
 0x5f0   :  { %2312 = vpow2.f32 %v1769_v13 }
 0x5fb   :  { %v2311_v14 = vpop.eup %2310 }
 0x5fc   :  { %v1387_v15 = vadd.f32 1.0, %v2311_v14 }
 0x5fd   :  { %v2313_v17 = vpop.eup %2312 }
 0x5fe   :  { %2314 = vrcp.f32 %v1387_v15  ;;  %v1394_v56 = vadd.f32 1.0, %v2313_v17 }
 0x60b   :  { %v2315_v63 = vpop.eup %2314 }
 0x60c   :  { %v1398_v60 = vmul.f32 %v2315_v63, %v1397_v53 }
 0x60e   :  { %v1399_v61 = vadd.f32 %v1398_v60, %v3836_v39  ;;  %v3845_v39 = vld [vmem:[#allocation23_spill] sm:$0xff] }
 0x610   :  { %2316 = vtanh.f32 %v1399_v61 }
 0x611   :  { %2318 = vrcp.f32 %v1394_v56 }
 0x61d   :  { %v2317_v0 = vpop.eup %2316 }
 0x61e   :  { %v1401_v1 = vsub.f32 %v3515_v18, %v2317_v0  ;;  %v2319_v4 = vpop.eup %2318 }
 0x620   :  { %v1402_v6 = vmul.f32 %v2319_v4, %v1401_v1 }
 0x622   :  { %v3666_v7 = vadd.f32 %v2317_v0, %v1402_v6 }
 0x624   :  { %1475 = vmatmul.mubr.f32.vlgmr.msra.gmra.mxu0 %v3666_v7  ;;  %2221 = vmatmul.mubr.f32.vlgmr.msra.gmra.mxu1 %v3666_v7 }
 0x625   :  { %1579 = vmatpush1.msra.mxu0 %v3286_v24  ;;  %2224 = vmatpush3.msra.mxu1 %v3292_v25  ;;  %v3838_v24 = vld [vmem:[#allocation4_spill] sm:$0xff]  ;;  %v3839_v25 = vld [vmem:[#allocation11_spill] sm:$0xff] }
 0x626   :  { %1580 = vmatprep.subr.mxu0 %v3298_v44  ;;  %2225 = vmatprep.subr.mxu1 %v3800_v42  ;;  %v3840_v44 = vld [vmem:[#allocation22_spill] sm:$0xff] }
 0x627   :  { %1581 = vmatpush1.msra.mxu0 %v3305_v3  ;;  %2226 = vmatpush3.msra.mxu1 %v3527_v19  ;;  %v3841_v3 = vld [vmem:[#allocation12_spill] sm:$0xff] }
 0x628   :  { %1582 = vmatprep.subr.mxu0 %v3312_v41  ;;  %2227 = vmatprep.subr.mxu1 %v3800_v42 }
 0x629   :  { %1583 = vmatpush1.msra.mxu0 %v3319_v43  ;;  %2228 = vmatpush3.msra.mxu1 %v3536_v20 }
 0x62a   :  { %1584 = vmatprep.subr.mxu0 %v3326_v27  ;;  %2229 = vmatprep.subr.mxu1 %v3800_v42  ;;  %v3842_v27 = vld [vmem:[#allocation20_spill] sm:$0xff] }
 0x62b   :  { %1585 = vmatpush1.msra.mxu0 %v3333_v5  ;;  %2230 = vmatpush3.msra.mxu1 %v3545_v21  ;;  %v3846_v21 = vld [vmem:[#allocation24_spill] sm:$0xff] }
 0x62c   :  { %1586 = vmatprep.subr.mxu0 %v3340_v28  ;;  %2231 = vmatprep.subr.mxu1 %v3800_v42 }
 0x62d   :  { %1587 = vmatpush1.msra.mxu0 %v3347_v48  ;;  %2232 = vmatpush3.msra.mxu1 %v3554_v23 }
 0x62e   :  { %1588 = vmatprep.subr.mxu0 %v3354_v29  ;;  %2233 = vmatprep.subr.mxu1 %v3800_v42 }
 0x62f   :  { %1589 = vmatpush1.msra.mxu0 %v3361_v9  ;;  %2234 = vmatpush3.msra.mxu1 %v3563_v11  ;;  %v3843_v9 = vld [vmem:[#allocation21_spill] sm:$0xff] }
 0x630   :  { %1590 = vmatprep.subr.mxu0 %v3368_v30  ;;  %2235 = vmatprep.subr.mxu1 %v3800_v42 }
 0x631   :  { %1591 = vmatpush1.msra.mxu0 %v3375_v2  ;;  %2236 = vmatpush3.msra.mxu1 %v3572_v46 }
 0x632   :  { %1592 = vmatprep.subr.mxu0 %v3382_v31  ;;  %2237 = vmatprep.subr.mxu1 %v3800_v42 }
 0x633   :  { %1593 = vmatpush1.msra.mxu0 %v3389_v54  ;;  %2238 = vmatpush3.msra.mxu1 %v3581_v47 }
 0x634   :  { %1594 = vmatprep.subr.mxu0 %v3396_v32  ;;  %2239 = vmatprep.subr.mxu1 %v3800_v42 }
 0x635   :  { %1595 = vmatpush1.msra.mxu0 %v3403_v50  ;;  %2240 = vmatpush3.msra.mxu1 %v3590_v49 }
 0x636   :  { %1596 = vmatprep.subr.mxu0 %v3410_v33  ;;  %2241 = vmatprep.subr.mxu1 %v3800_v42 }
 0x637   :  { %1597 = vmatpush1.msra.mxu0 %v3417_v62  ;;  %2242 = vmatpush3.msra.mxu1 %v3599_v51 }
 0x638   :  { %1598 = vmatprep.subr.mxu0 %v3424_v34  ;;  %2243 = vmatprep.subr.mxu1 %v3800_v42  ;;  %v3844_v34 = vld [vmem:[#allocation30_spill] sm:$0xff] }
 0x639   :  { %1599 = vmatpush1.msra.mxu0 %v3431_v22  ;;  %2244 = vmatpush3.msra.mxu1 %v3608_v55 }
 0x63a   :  { %1600 = vmatprep.subr.mxu0 %v3438_v35  ;;  %2245 = vmatprep.subr.mxu1 %v3800_v42 }
 0x63b   :  { %1601 = vmatpush1.msra.mxu0 %v3445_v16  ;;  %2246 = vmatpush3.msra.mxu1 %v3617_v57 }
 0x63c   :  { %1602 = vmatprep.subr.mxu0 %v3452_v36  ;;  %2247 = vmatprep.subr.mxu1 %v3800_v42 }
 0x63d   :  { %1603 = vmatpush1.msra.mxu0 %v3459_v26  ;;  %2248 = vmatpush3.msra.mxu1 %v3626_v58  ;;  %v3847_v58 = vld [vmem:[#allocation29_spill] sm:$0xff] }
 0x63e   :  { %1604 = vmatprep.subr.mxu0 %v3466_v37  ;;  %2249 = vmatprep.subr.mxu1 %v3800_v42 }
 0x63f   :  { %1605 = vmatpush1.msra.mxu0 %v3473_v40  ;;  %2250 = vmatpush3.msra.mxu1 %v3635_v59 }
 0x640   :  { %1606 = vmatprep.subr.mxu0 %v3480_v38  ;;  %2251 = vmatprep.subr.mxu1 %v3800_v42 }
 0x641   :  { %1607 = vmatpush1.msra.mxu0 %v3837_v45  ;;  %2252 = vmatpush3.msra.mxu1 %v3838_v24 }
 0x642   :  { %1608 = vmatprep.subr.mxu0 %v3839_v25  ;;  %2253 = vmatprep.subr.mxu1 %v3800_v42 }
 0x643   :  { %1609 = vmatpush1.msra.mxu0 %v3840_v44  ;;  %1642 = vmatprep.mubr.f32.mxu0 %v3800_v42 }
 0x644   :  { %2254 = vmatpush3.msra.mxu1 %v3841_v3  ;;  %2255 = vmatprep.mubr.msk.f32.mxu1 %vm2390_vm0, %v3800_v42  ;;  %v2388_v42 = vld [vmem:[%s3752_s4] ss:$0 sm:$0xff] }
 0x6e4   :  { %v1476_v41 = vpop.f32.mrf.mxu0  ;;  %v1547_v43 = vpop.f32.mrf.mxu1 }
 0x6e5   :  { %v1551_v5 = vadd.f32 %v1476_v41, %v3842_v27  ;;  %v1565_v50 = vadd.f32 %v2388_v42, %v1547_v43 }
 0x6e6   :  { %v2222_v28 = vpop.f32.mrf.mxu1  ;;  %v1478_v29 = vpop.f32.mrf.mxu0 }
 0x6e7   :  { %v1770_v48 = vmul.f32 -1.442695, %v1551_v5  ;;  %v1558_v30 = vadd.f32 %v1478_v29, %v3843_v9 }
 0x6e9   :  { %2320 = vpow2.f32 %v1770_v48  ;;  %v1771_v2 = vmul.f32 -1.442695, %v1558_v30 }
 0x6eb   :  { %2322 = vpow2.f32 %v1771_v2 }
 0x6f6   :  { %v2321_v31 = vpop.eup %2320 }
 0x6f7   :  { %v1555_v54 = vadd.f32 1.0, %v2321_v31 }
 0x6f8   :  { %v2323_v32 = vpop.eup %2322 }
 0x6f9   :  { %2324 = vrcp.f32 %v1555_v54  ;;  %v1562_v35 = vadd.f32 1.0, %v2323_v32 }
 0x706   :  { %v2325_v33 = vpop.eup %2324 }
 0x707   :  { %v1566_v62 = vmul.f32 %v2325_v33, %v1565_v50 }
 0x709   :  { %v1567_v22 = vadd.f32 %v1566_v62, %v3844_v34 }
 0x70b   :  { %2326 = vtanh.f32 %v1567_v22 }
 0x70c   :  { %2328 = vrcp.f32 %v1562_v35 }
 0x718   :  { %v2327_v16 = vpop.eup %2326 }
 0x719   :  { %v1569_v36 = vsub.f32 %v3666_v7, %v2327_v16  ;;  %v2329_v26 = vpop.eup %2328 }
 0x71b   :  { %v1570_v37 = vmul.f32 %v2329_v26, %v1569_v36 }
 0x71d   :  { %v1571_v40 = vadd.f32 %v2327_v16, %v1570_v37 }
 0x71f   :  { %1643 = vmatmul.mubr.f32.vlgmr.msra.gmra.mxu0 %v1571_v40  ;;  %2256 = vmatmul.mubr.f32.vlgmr.msra.gmra.mxu1 %v1571_v40 }
 0x7df   :  { %v1644_v38 = vpop.f32.mrf.mxu0  ;;  %v1715_v56 = vpop.f32.mrf.mxu1 }
 0x7e0   :  { %v1719_v60 = vadd.f32 %v1644_v38, %v3845_v39  ;;  %v1733_v51 = vadd.f32 %v2388_v42, %v1715_v56 }
 0x7e1   :  { %v2257_v18 = vpop.f32.mrf.mxu1  ;;  %v1646_v20 = vpop.f32.mrf.mxu0 }
 0x7e2   :  { %v1772_v19 = vmul.f32 -1.442695, %v1719_v60  ;;  %v1726_v23 = vadd.f32 %v1646_v20, %v3846_v21 }
 0x7e4   :  { %2330 = vpow2.f32 %v1772_v19  ;;  %v1773_v11 = vmul.f32 -1.442695, %v1726_v23 }
 0x7e6   :  { %2332 = vpow2.f32 %v1773_v11 }
 0x7f1   :  { %v2331_v46 = vpop.eup %2330 }
 0x7f2   :  { %v1723_v47 = vadd.f32 1.0, %v2331_v46 }
 0x7f3   :  { %v2333_v49 = vpop.eup %2332 }
 0x7f4   :  { %2334 = vrcp.f32 %v1723_v47  ;;  %v1730_v61 = vadd.f32 1.0, %v2333_v49 }
 0x801   :  { %v2335_v55 = vpop.eup %2334 }
 0x802   :  { %v1734_v57 = vmul.f32 %v2335_v55, %v1733_v51 }
 0x804   :  { %v1735_v59 = vadd.f32 %v1734_v57, %v3847_v58 }
 0x806   :  { %2336 = vtanh.f32 %v1735_v59 }
 0x807   :  { %2338 = vrcp.f32 %v1730_v61 }
 0x813   :  { %v2337_v63 = vpop.eup %2336 }
 0x814   :  { %v1737_v52 = vsub.f32 %v1571_v40, %v2337_v63  ;;  %v2339_v8 = vpop.eup %2338 }
 0x816   :  { %v1738_v10 = vmul.f32 %v2339_v8, %v1737_v52 }
 0x818   :  { %v1739_v12 = vadd.f32 %v2337_v63, %v1738_v10 }
 0x81a   :  { %1745 = vst [vmem:[%s3753_s5] sm:$0xff] %v1739_v12 }

</bundles_post_ra>
